<compile_context>
chip_gen: v5e
topology: v5e:2x2
jax: 0.10.0
libtpu: 0.0.40
codegen_flags: <defaults>
</compile_context>

<pallas_src>
import math

import jax
import jax.numpy as jnp
from jax.experimental import pallas as pl
from jax.experimental.pallas import tpu as pltpu

BN = 8  # samples per outer grid step (sublane-aligned block for h/r/t/out)


# ----------------------------- Pallas kernel ------------------------------
def _cont_kernel(tem_idx_ref, g_ref, h_ref, r_ref, t_ref, out_ref):
    """One (outer, inner) grid step == one sample.

    g_ref   : (1, D, D, D)  core-tensor slice for this sample's timestamp
                            (gathered by the data-dependent index_map)
    h_ref   : (BN, D)       head embeddings for the BN samples of this group
    r_ref   : (BN, D)       relation embeddings
    t_ref   : (BN, D)       tail embeddings
    out_ref : (BN, 1)       per-sample scores (resident across the inner axis)
    """
    j = pl.program_id(1)

    g = g_ref[0]                       # (D, D, D), axes (i, jr, k)
    h = h_ref[pl.ds(j, 1), :]          # (1, D)
    r = r_ref[pl.ds(j, 1), :]          # (1, D)
    t = t_ref[pl.ds(j, 1), :]          # (1, D)

    # contract k (lane axis) with t:   a[i, jr] = sum_k g[i, jr, k] * t[k]
    a = jnp.sum(g * t[None, :, :], axis=2)                 # (D, D)
    # contract jr (lane axis) with r:  b[i] = sum_jr a[i, jr] * r[jr]
    b = jnp.sum(a * r, axis=1, keepdims=True)              # (D, 1)
    # contract i with h:               score = sum_i h[i] * b[i]
    score = jnp.sum(jnp.transpose(b) * h, axis=1, keepdims=True)   # (1, 1)

    out_ref[pl.ds(j, 1), :] = score


# ------------------------------- wrapper -----------------------------------
def cont_forward(samples, params, emb_dim, include_g_factor=False):
    """samples: (N, 4) with columns (h, r, t, tem) -- matches the torch model
    (samples[:, 0].long(), ..., samples[:, 3].long()).  Returns (scores, factors)."""
    samples = jnp.asarray(samples)
    h_i = samples[:, 0].astype(jnp.int32)
    r_i = samples[:, 1].astype(jnp.int32)
    t_i = samples[:, 2].astype(jnp.int32)
    tem_i = samples[:, 3].astype(jnp.int32)

    D = emb_dim
    g = params['g']                                   # (num_tem, D, D, D)
    assert g.shape[1:] == (D, D, D)

    # small per-row gathers (N*D each) stay in plain-JAX glue; the big g
    # gather is fused into the kernel via the scalar-prefetched indices.
    h_e = params['ent_head'][h_i].astype(jnp.float32)  # (N, D)
    t_e = params['ent_tail'][t_i].astype(jnp.float32)  # (N, D)
    r_e = params['rel'][r_i].astype(jnp.float32)       # (N, D)

    N = h_i.shape[0]
    n_pad = (-N) % BN
    if n_pad:
        # pad with zero rows and timestamp 0 (a valid index); padded scores
        # are discarded below, and there is no division so no NaN risk.
        zpad = jnp.zeros((n_pad, D), jnp.float32)
        h_e = jnp.concatenate([h_e, zpad], axis=0)
        t_e = jnp.concatenate([t_e, zpad], axis=0)
        r_e = jnp.concatenate([r_e, zpad], axis=0)
        tem_pad = jnp.concatenate([tem_i, jnp.zeros((n_pad,), jnp.int32)])
    else:
        tem_pad = tem_i
    Np = N + n_pad

    g_spec = pl.BlockSpec(
        (1, D, D, D),
        lambda i, j, tem_ref: (tem_ref[i * BN + j], 0, 0, 0))
    vec_spec = pl.BlockSpec((BN, D), lambda i, j, tem_ref: (i, 0))
    out_spec = pl.BlockSpec((BN, 1), lambda i, j, tem_ref: (i, 0))

    out = pl.pallas_call(
        _cont_kernel,
        out_shape=jax.ShapeDtypeStruct((Np, 1), jnp.float32),
        grid_spec=pltpu.PrefetchScalarGridSpec(
            num_scalar_prefetch=1,
            grid=(Np // BN, BN),
            in_specs=[g_spec, vec_spec, vec_spec, vec_spec],
            out_specs=out_spec),
        compiler_params=pltpu.CompilerParams(
            dimension_semantics=("parallel", "arbitrary")),
    )(tem_pad, g, h_e, r_e, t_e)

    scores = out[:N, 0]

    # factors mirror torch's {'L2': (h_e, t_e, r_e, g_t)}; gathering the full
    # g[tem] slab is only done on demand so the fast scoring path never
    # materializes the (N, D, D, D) intermediate in HBM.
    factors = {'L2': (h_e[:N], t_e[:N], r_e[:N])}
    if include_g_factor:
        factors['L2'] = factors['L2'] + (g[tem_i],)
    # TODO(synk): fit()/predict() negative-sampling reshapes are host-side
    # glue around this forward and are not part of the kernel.
    return scores, factors


# --------------------------- parameter init --------------------------------
def init_params(key, num_ent, num_rel, num_tem, emb_dim):
    k1, k2, k3, k4 = jax.random.split(key, 4)

    def xavier(k, shape):
        fan_in, fan_out = shape[-2], shape[-1]
        bound = math.sqrt(6.0 / (fan_in + fan_out))
        return jax.random.uniform(k, shape, jnp.float32, -bound, bound)

    return {
        'ent_head': xavier(k1, (num_ent, emb_dim)),
        'ent_tail': xavier(k2, (num_ent, emb_dim)),
        'rel':      xavier(k3, (num_rel, emb_dim)),
        'g':        xavier(k4, (num_tem, emb_dim, emb_dim, emb_dim)),
    }


# ------------------------------ reference ----------------------------------
def cont_reference(samples, params):
    h_i = samples[:, 0].astype(jnp.int32)
    r_i = samples[:, 1].astype(jnp.int32)
    t_i = samples[:, 2].astype(jnp.int32)
    tem_i = samples[:, 3].astype(jnp.int32)
    h_e = params['ent_head'][h_i]
    t_e = params['ent_tail'][t_i]
    r_e = params['rel'][r_i]
    g_t = params['g'][tem_i]                             # (N, D, D, D)
    s = jnp.sum(g_t * h_e[:, :, None, None], axis=1)     # (N, D, D)
    s = jnp.sum(s * r_e[:, :, None], axis=1)             # (N, D)
    s = jnp.sum(s * t_e, axis=1)                         # (N,)
    return s


# -------------------------------- main --------------------------------------
if __name__ == "__main__":
    NUM_ENT, NUM_REL, NUM_TEM, EMB_DIM = 32, 8, 8, 32
    N = 16  # number of (h, r, t, tem) samples

    key = jax.random.PRNGKey(0)
    kp, kh, kr, kt, ktem = jax.random.split(key, 5)

    params = init_params(kp, NUM_ENT, NUM_REL, NUM_TEM, EMB_DIM)

    h = jax.random.randint(kh, (N,), 0, NUM_ENT)
    r = jax.random.randint(kr, (N,), 0, NUM_REL)
    t = jax.random.randint(kt, (N,), 0, NUM_ENT)
    tem = jax.random.randint(ktem, (N,), 0, NUM_TEM)
    # torch passes a float sample tensor and .long()s the columns; mimic that.
    samples = jnp.stack([h, r, t, tem], axis=1).astype(jnp.float32)  # (N, 4)

    scores, factors = cont_forward(samples, params, EMB_DIM)
    scores = jax.block_until_ready(scores)

    ref = cont_reference(samples, params)
    assert scores.shape == (N,)
    assert jnp.allclose(scores, ref, rtol=1e-4, atol=1e-4), (scores, ref)

    print("KERNEL_OK")
</pallas_src>

<mosaic_0001>
module attributes {stable_mosaic.version = 11 : i64} {
  func.func @_cont_kernel(%arg0: i32, %arg1: i32, %arg2: memref<16xi32, #tpu.memory_space<smem>>, %arg3: memref<1x32x32x32xf32, #tpu.memory_space<vmem>>, %arg4: memref<8x32xf32, #tpu.memory_space<vmem>>, %arg5: memref<8x32xf32, #tpu.memory_space<vmem>>, %arg6: memref<8x32xf32, #tpu.memory_space<vmem>>, %arg7: memref<8x1xf32, #tpu.memory_space<vmem>>) attributes {dimension_semantics = [#tpu.dimension_semantics<parallel>, #tpu.dimension_semantics<arbitrary>], iteration_bounds = array<i64: 2, 8>, scalar_prefetch = 1 : i64, scratch_operands = 0 : i64, tpu.core_type = #tpu.core_type<tc>, window_params = [{transform_indices = @transform_0, window_bounds = array<i64: 1, 32, 32, 32>}, {transform_indices = @transform_1, window_bounds = array<i64: 8, 32>}, {transform_indices = @transform_2, window_bounds = array<i64: 8, 32>}, {transform_indices = @transform_3, window_bounds = array<i64: 8, 32>}, {transform_indices = @transform_4, window_bounds = array<i64: 8, 1>}]} {
    %c0 = arith.constant 0 : index
    %c0_0 = arith.constant 0 : index
    %c0_1 = arith.constant 0 : index
    %c0_2 = arith.constant 0 : index
    %0 = vector.load %arg3[%c0, %c0_0, %c0_1, %c0_2] : memref<1x32x32x32xf32, #tpu.memory_space<vmem>>, vector<1x32x32x32xf32>
    %1 = vector.shape_cast %0 : vector<1x32x32x32xf32> to vector<32x32x32xf32>
    %2 = arith.index_cast %arg1 : i32 to index
    %c0_3 = arith.constant 0 : index
    %3 = vector.load %arg4[%2, %c0_3] : memref<8x32xf32, #tpu.memory_space<vmem>>, vector<1x32xf32>
    %4 = arith.index_cast %arg1 : i32 to index
    %c0_4 = arith.constant 0 : index
    %5 = vector.load %arg5[%4, %c0_4] : memref<8x32xf32, #tpu.memory_space<vmem>>, vector<1x32xf32>
    %6 = arith.index_cast %arg1 : i32 to index
    %c0_5 = arith.constant 0 : index
    %7 = vector.load %arg6[%6, %c0_5] : memref<8x32xf32, #tpu.memory_space<vmem>>, vector<1x32xf32>
    %8 = vector.shape_cast %7 : vector<1x32xf32> to vector<1x1x32xf32>
    %9 = vector.broadcast %8 : vector<1x1x32xf32> to vector<32x32x32xf32>
    %10 = arith.mulf %1, %9 : vector<32x32x32xf32>
    %cst = arith.constant dense<0.000000e+00> : vector<32x32xf32>
    %11 = vector.multi_reduction <add>, %10, %cst [2] : vector<32x32x32xf32> to vector<32x32xf32>
    %12 = vector.broadcast %5 : vector<1x32xf32> to vector<32x32xf32>
    %13 = arith.mulf %11, %12 : vector<32x32xf32>
    %cst_6 = arith.constant dense<0.000000e+00> : vector<32xf32>
    %14 = vector.multi_reduction <add>, %13, %cst_6 [1] : vector<32x32xf32> to vector<32xf32>
    %15 = vector.shape_cast %14 : vector<32xf32> to vector<32x1xf32>
    %16 = tpu.transpose %15, [1, 0] : vector<32x1xf32> -> vector<1x32xf32>
    %17 = arith.mulf %16, %3 : vector<1x32xf32>
    %cst_7 = arith.constant dense<0.000000e+00> : vector<1xf32>
    %18 = vector.multi_reduction <add>, %17, %cst_7 [1] : vector<1x32xf32> to vector<1xf32>
    %19 = vector.shape_cast %18 : vector<1xf32> to vector<1x1xf32>
    %20 = arith.index_cast %arg1 : i32 to index
    %c0_8 = arith.constant 0 : index
    %21 = vector.load %arg7[%20, %c0_8] : memref<8x1xf32, #tpu.memory_space<vmem>>, vector<1x1xf32>
    tpu.vector_store %arg7[%20, %c0_8], %19 {strides = array<i32>} : memref<8x1xf32, #tpu.memory_space<vmem>>, vector<1x1xf32>,
    return
  }
  func.func @transform_0(%arg0: i32, %arg1: i32, %arg2: memref<16xi32, #tpu.memory_space<smem>>) -> (i32, i32, i32, i32) {
    %c8_i32 = arith.constant 8 : i32
    %0 = arith.muli %arg0, %c8_i32 : i32
    %1 = arith.addi %0, %arg1 : i32
    %2 = arith.index_cast %1 : i32 to index
    %3 = memref.load %arg2[%2] : memref<16xi32, #tpu.memory_space<smem>>
    %c0_i32 = arith.constant 0 : i32
    %c0_i32_0 = arith.constant 0 : i32
    %c0_i32_1 = arith.constant 0 : i32
    %c0_i32_2 = arith.constant 0 : i32
    return %3, %c0_i32, %c0_i32_0, %c0_i32_1 : i32, i32, i32, i32
  }
  func.func @transform_1(%arg0: i32, %arg1: i32, %arg2: memref<16xi32, #tpu.memory_space<smem>>) -> (i32, i32) {
    %c0_i32 = arith.constant 0 : i32
    %c0_i32_0 = arith.constant 0 : i32
    return %arg0, %c0_i32 : i32, i32
  }
  func.func @transform_2(%arg0: i32, %arg1: i32, %arg2: memref<16xi32, #tpu.memory_space<smem>>) -> (i32, i32) {
    %c0_i32 = arith.constant 0 : i32
    %c0_i32_0 = arith.constant 0 : i32
    return %arg0, %c0_i32 : i32, i32
  }
  func.func @transform_3(%arg0: i32, %arg1: i32, %arg2: memref<16xi32, #tpu.memory_space<smem>>) -> (i32, i32) {
    %c0_i32 = arith.constant 0 : i32
    %c0_i32_0 = arith.constant 0 : i32
    return %arg0, %c0_i32 : i32, i32
  }
  func.func @transform_4(%arg0: i32, %arg1: i32, %arg2: memref<16xi32, #tpu.memory_space<smem>>) -> (i32, i32) {
    %c0_i32 = arith.constant 0 : i32
    %c0_i32_0 = arith.constant 0 : i32
    return %arg0, %c0_i32 : i32, i32
  }
}

</mosaic_0001>

<bundles_post_ra>
// kernel: tpu_custom_call.1
= control target key start
LH: loop header
LB: loop body
LE: loop exit
PB: predicated region body
PF: predicated region fallthrough
CT: control target
= control target key end

     0   :  { %s2540_s21 = smov [#allocation3]   ;;  %s4084_s0 = inlined_call_operand.hbm [shape: s32[16], index: 0, kind: input, shape index: {}]   ;;  %s4085_s1 = inlined_call_operand.hbm [shape: f32[8,32,32,32], index: 1, kind: input, shape index: {}]   ;;  %s4086_s2 = inlined_call_operand.hbm [shape: f32[16,32], index: 2, kind: input, shape index: {}]   ;;  %s4087_s3 = inlined_call_operand.hbm [shape: f32[16,32], index: 3, kind: input, shape index: {}]   ;;  %s4088_s4 = inlined_call_operand.hbm [shape: f32[16,32], index: 4, kind: input, shape index: {}]   ;;  %s4089_s5 = inlined_call_operand.vmem [shape: f32[16,1], index: 5, kind: output, shape index: {}]  }
   0x1   :  { %4101 = sst [smem:[#allocation98_spill]] %s4086_s2  ;;  %s11_s20 = sshll.u32 %s4084_s0, 4  ;;  %s12_s20 = int_to_ptr.hbm [resolvable:$true] %s11_s20 }
   0x2   :  { %4102 = sst [smem:[#allocation99_spill]] %s4089_s5 }
   0x3   :  { %14 = dma.hbm_to_smem %s12_s20, 16, %s2540_s21, [#allocation2] }
   0x4   :  { %2482 = dma.done.wait [#allocation2], 16 }
   0x5   :  { %2483 = vsyncadd [#allocation2], 4294967280 }
   0x6   :  { %17 = sfence }
   0x7   :  { %18 = vsyncpa [#allocation5], 0 }
   0x8   :  { %20 = vsyncpa [#allocation5 + $0x1], 0 }
   0x9   :  { %21 = vsyncpa [#allocation7], 0 }
   0xa   :  { %23 = vsyncpa [#allocation7 + $0x1], 0 }
   0xb   :  { %24 = vsyncpa [#allocation10], 0 }
   0xc   :  { %26 = vsyncpa [#allocation10 + $0x1], 0  ;;  %s2577_s22 = smov 0   ;;  %s2579_s23 = smov 0  }
   0xd   :  { %s2581_s24 = smov 0   ;;  %s2583_s25 = smov 0  }
   0xe   :  { %s2585_s0 = smov 0   ;;  %s2587_s26 = smov 0  }
   0xf   :  { %s2589_s27 = smov 0   ;;  %s2591_s28 = smov 0  }
  0x10   :  { %s2593_s29 = smov 0   ;;  %s2595_s30 = smov 0  }
  0x11   :  { %s2597_s6 = smov 0  }
  0x12 LB: > { %4103 = sst [smem:[#allocation17_spill]] %s2518_s26  ;;  %s4090_s7 = sadd.s32 4294967295, %s2538_s6   ;;  %s2538_s6 = sphi %s2597_s6, %s32_s6   ;;  %s2534_s30 = sphi %s2595_s30, %s4278_s30   ;;  %s2530_s29 = sphi %s2593_s29, %s4284_s29   ;;  %s2526_s28 = sphi %s2591_s28, %s4276_s28   ;;  %s2522_s27 = sphi %s2589_s27, %s4275_s27   ;;  %s2518_s26 = sphi %s2587_s26, %s4274_s26   ;;  %s2514_s0 = sphi %s2585_s0, %s4283_s0   ;;  %s2510_s25 = sphi %s2583_s25, %s4282_s25   ;;  %s2506_s24 = sphi %s2581_s24, %s4281_s24   ;;  %s2502_s23 = sphi %s2579_s23, %s4280_s23   ;;  %s2498_s22 = sphi %s2577_s22, %s4279_s22  }
  0x13   : > { %4104 = sst [smem:[#allocation18_spill]] %s2522_s27  ;;  %s41_s8 = sadd.s32 1, %s2530_s29 }
  0x14   : > { %4105 = sst [smem:[#allocation19_spill]] %s2526_s28  ;;  %p42_p0 = scmp.ge.s32.totalorder %s41_s8, 8 }
  0x15   : > { %4106 = sst [smem:[#allocation20_spill]] %s2530_s29  ;;  %s44_s9 = sadd.s32 1, %s2534_s30 }
  0x16   : > { %4107 = sst [smem:[#allocation21_spill]] %s2534_s30  ;;  %s2634_s10 = sshll.u32 %s2534_s30, 3 }
  0x17   : > { %s57_s11 = sadd.s32 1, %s2518_s26  ;;  %s4286_s8 = smov (%p42_p0, %s41_s8), 0 }
  0x18   : > { %4108 = sst [smem:[#allocation22_spill]] %s4286_s8  ;;  %s4288_s9 = smov (!%p42_p0, %s44_s9), %s2534_s30 }
  0x19   : > { %s2642_s12 = sadd.s32 %s2530_s29, %s2634_s10  ;;  %p64_p1 = scmp.ne.s32.totalorder %s2518_s26, %s2514_s0 }
  0x1a   : > { %p46_p2 = scmp.ge.s32.totalorder %s4288_s9, 2  ;;  %s50_s13 = sld [smem:[#allocation3 + %s2642_s12]] }
  0x1b   : > { %p65_p3 = scmp.eq.s32.totalorder %s2538_s6, 0  ;;  %p70_p4 = scmp.ne.s32.totalorder %s2514_s0, %s2510_s25 }
  0x1c   : > { %s4290_s9 = smov (%p46_p2, %s4288_s9), 0  ;;  %p2659_p6 = scmp.eq.s32.totalorder %s4090_s7, 0 }
  0x1d   : > { %4109 = sst [smem:[#allocation23_spill]] %s4290_s9  ;;  %p2653_p5 = por %p65_p3, %p64_p1 }
  0x1e   : > { %s2155_s16 = sshll.u32 %s4290_s9, 3  ;;  %s80_s17 = ssub.s32 %s2534_s30, %s4290_s9 }
  0x1f   : > { %s52_s18 = sadd.s32 %s2155_s16, %s4286_s8  ;;  %p2669_p7 = por %p2659_p6, %p70_p4 }
  0x20   : > { %s53_s20 = sld [smem:[#allocation3 + %s52_s18]]  ;;  %p81_p8 = scmp.eq.s32.totalorder %s80_s17, 0 }
  0x21   : > { %s83_s21 = sadd.s32 1, %s2506_s24  ;;  %p90_p9 = scmp.ne.s32.totalorder %s2506_s24, %s2502_s23 }
  0x22   : > { %s2677_s25 = scalar_select %p81_p8, %s2506_s24, %s83_s21  }
  0x23   : > { %p2681_p10 = por %p90_p9, %p65_p3  ;;  %p96_p11 = scmp.ne.s32.totalorder %s2502_s23, %s2498_s22 }
  0x24   : > { %4113 = sst [smem:[#allocation24_spill]] %s2677_s25  ;;  %p2202_p12 = scmp.lt.s32.totalorder %s2538_s6, 16 }
  0x25   : > { %p2690_p13 = por %p96_p11, %p2659_p6  ;;  %s223_s17 = sand.u32 1, %s2538_s6  }
  0x26   : > { %s54_s18 = ssub.s32 %s50_s13, %s53_s20  ;;  %s4094_s21 = sand.u32 1, %s2506_s24  }
  0x27   : > { %p55_p0 = scmp.eq.s32.totalorder %s54_s18, 0  ;;  %s4292_s12 = smov (!%p2653_p5, %s2642_s12), 0 }
  0x28   : > { %s2706_s15 = sshll.u32 %s4094_s21, 3  ;;  %s4117_s2 = sld [smem:[#allocation98_spill]] }
  0x29   : > { %s2702_s22 = scalar_select %p55_p0, %s2518_s26, %s57_s11  }
  0x2a   : > { %s227_s20 = scalar_lea.vmem [#allocation6], %s2706_s15  ;;  %p2717_p1 = pnand %p2202_p12, %p2681_p10 }
  0x2b   : > { %4116 = sst [smem:[#allocation25_spill]] %s2702_s22  ;;  %s235_s18 = sshll.u32 %s227_s20, 4  ;;  %s236_s18 = int_to_ptr.vmem [resolvable:$true] %s235_s18 }
  0x2c   : > { %p2168_p2 = scmp.ge.s32.totalorder %s2538_s6, 1  ;;  %p278_p3 = scmp.lt.s32.totalorder %s2538_s6, 17 }
  0x2d   : > { %s224_s8 = scalar_lea.sflag [#allocation7], %s223_s17  ;;  %s198_s9 = sand.u32 1, %s2518_s26  }
  0x2e   : > { %s231_s30 = scalar_lea.hbm %s4117_s2, %s2634_s10  ;;  %p2725_p4 = pnand %p2168_p2, %p278_p3 }
  0x2f   : > { %s233_s13 = sshll.u32 %s231_s30, 4  ;;  %p2734_p6 = pnand %p2202_p12, %p2653_p5  ;;  %s234_s13 = int_to_ptr.hbm [resolvable:$true] %s233_s13 }
  0x30   : > { %2195 = dma.hbm_to_vmem [thread:$0]  (!%p2717_p1), %s234_s13, 128, %s236_s18, %s224_s8  }
  0x31   : > { %s2158_s20 = sshll.u32 %s198_s9, 10  ;;  %s4294_s12 = smov (!%p2202_p12, %s4292_s12), 0 }
  0x32   : > { %s2177_s21 = scalar_select %p2653_p5, [#allocation3], [#allocation11] }
  0x33   : > { %s202_s17 = scalar_lea.vmem [#allocation4], %s2158_s20  ;;  %s250_s22 = scalar_lea.hbm %s4087_s3, %s2634_s10 }
  0x34   : > { %s4296_s21 = smov (!%p2202_p12, %s2177_s21), [#allocation12]  ;;  %s2744_s13 = sshll.u32 %s202_s17, 4 }
  0x35   : > { %4121 = sst [smem:[#allocation26_spill]] %s2744_s13  ;;  %s246_s26 = scalar_lea.vmem [#allocation8], %s2706_s15 }
  0x36   : > { %s205_s18 = sld [smem:[%s4296_s21 + %s4294_s12]]  ;;  %s254_s25 = sshll.u32 %s246_s26, 4  ;;  %s255_s25 = int_to_ptr.vmem [resolvable:$true] %s254_s25 }
  0x37   : > { %s252_s5 = sshll.u32 %s250_s22, 4  ;;  %s269_s21 = scalar_lea.hbm %s4088_s4, %s2634_s10  ;;  %s253_s5 = int_to_ptr.hbm [resolvable:$true] %s252_s5 }
  0x38   : > { %2198 = dma.hbm_to_vmem [thread:$0]  (!%p2717_p1), %s253_s5, 128, %s255_s25, %s224_s8  }
  0x39   : > { %s271_s2 = sshll.u32 %s269_s21, 4  ;;  %s199_s26 = scalar_lea.sflag [#allocation5], %s198_s9  ;;  %s272_s2 = int_to_ptr.hbm [resolvable:$true] %s271_s2 }
  0x3a   : > { %p2382_p8 = pneg %p2734_p6  ;;  %s2385_s25 = scalar_lea.hbm %s4085_s1, 8192 }
  0x3c   : > { %s2176_s14 = sshll.u32 %s205_s18, 10 }
  0x3d   : > { %s210_s17 = scalar_lea.hbm %s4085_s1, %s2176_s14 }
  0x3e   : > { %s211_s13 = sshll.u32 %s210_s17, 4  ;;  %s212_s13 = int_to_ptr.hbm [resolvable:$true] %s211_s13 }
  0x3f   : > { %s2378_s29 = sshra.s32 %s212_s13, 4  ;;  %s2379_s29 = int_to_ptr.hbm [resolvable:$true] %s2378_s29 }
  0x40   : > { %s2380_s22 = scalar_lea.hbm %s2379_s29, 1024  ;;  %p2386_p11 = scmp.lt.s32.totalorder %s2379_s29, %s4085_s1 }
  0x41   : > { %p2381_p5 = scmp.ne.s32.totalorder %s2379_s29, %s2380_s22  ;;  %p2387_p12 = scmp.lt.s32.totalorder %s2385_s25, %s2380_s22 }
  0x43   : > { %p2383_p9 = pnand %p2382_p8, %p2381_p5  ;;  %p2388_p0 = por %p2387_p12, %p2386_p11 }
  0x45   : > { %p2384_p10 = pneg %p2383_p9 }
  0x47   : > { %p2389_p2 = pnand %p2388_p0, %p2384_p10 }
  0x49   : > { %2392 = shalt.err (!%p2389_p2)
}
  0x4a   : > { %s2541_s10 = smov 128   ;;  %s4122_s9 = sld [smem:[#allocation26_spill]] }
  0x4b   : > { %s2542_s18 = smov 8   ;;  %s265_s20 = scalar_lea.vmem [#allocation9], %s2706_s15 }
  0x4c   : > { %s273_s17 = sshll.u32 %s265_s20, 4  ;;  %s4124_s12 = sand.u32 1, %s2506_s24   ;;  %s274_s17 = int_to_ptr.vmem [resolvable:$true] %s273_s17 }
  0x4d   : > { %s262_s21 = scalar_lea.sflag [#allocation10], %s4124_s12  ;;  %282 = sbr.rel (%p2725_p4) target bundleno = 1401 (0x579), region = 36 }
  0x4e   : > { %2201 = dma.hbm_to_vmem [thread:$0]  (!%p2717_p1), %s272_s2, 128, %s274_s17, %s262_s21  }
  0x50   : > { %s4123_s14 = int_to_ptr.vmem [resolvable:$true] %s4122_s9 }
  0x51   : > { %2192 = dma.hbm_to_vmem [thread:$0]  (!%p2734_p6), %s212_s13, 16384, %s4123_s14, %s199_s26, %s2541_s10, %s2541_s10, %s2542_s18  }
  0x52   : > { %s284_s29 = sand.u32 1, %s2514_s0  }
  0x53   : > { %s2169_s22 = sshll.u32 %s284_s29, 10  ;;  %s285_s5 = scalar_lea.sflag [#allocation5], %s284_s29 }
  0x54   : > { %s2781_s28 = scalar_lea.vmem [#allocation4], %s2169_s22 }
  0x55   : > { %2485 = dma.done.wait (%p2669_p7), %s285_s5, 16384  }
  0x56   : > { %2487 = vsyncadd (%p2669_p7), %s285_s5, 4294950912  ;;  %s4125_s15 = sadd.s32 4294967295, %s2538_s6   ;;  %s296_s7 = sand.u32 1, %s2502_s23  }
  0x57   : > { %s294_s11 = sand.u32 1, %s4125_s15   ;;  %s2790_s30 = sshll.u32 %s296_s7, 3 }
  0x58   : > { %s295_s13 = scalar_lea.sflag [#allocation7], %s294_s11  ;;  %s298_s2 = scalar_lea.vmem [#allocation6], %s2790_s30 }
  0x59   : > { %2489 = dma.done.wait (%p2690_p13), %s295_s13, 256  }
  0x5a   : > { %2491 = vsyncadd (%p2690_p13), %s295_s13, 4294967040  ;;  %s308_s19 = scalar_lea.vmem [#allocation8], %s2790_s30  ;;  %s315_s26 = scalar_lea.sflag [#allocation10], %s296_s7 }
  0x5b   : > { %s318_s25 = scalar_lea.vmem [#allocation9], %s2790_s30 }
  0x5c   : > { %2493 = dma.done.wait (%p2690_p13), %s315_s26, 128  }
  0x5d   : > { %2495 = vsyncadd (%p2690_p13), %s315_s26, 4294967168  ;;  %s4126_s8 = sld [smem:[#allocation18_spill]]  ;;  %v369_v0 = vld [vmem:[%s2781_s28 + $0x20] sm:$0xff]  ;;  %vm628_vm0 = vcmask 261120   ;;  %v367_v2 = vld [vmem:[%s2781_s28 + $0x10] sm:$0xff]  ;;  %vm1688_vm1 = vcmask 130112  }
  0x5e   : > { %v365_v3 = vld [vmem:[%s2781_s28] sm:$0xff]  ;;  %v370_v7 = vld [vmem:[%s2781_s28 + $0x28] sm:$0xff]  ;;  %v368_v8 = vld [vmem:[%s2781_s28 + $0x18] sm:$0xff]  ;;  %vm1692_vm2 = vcmask 195712   ;;  %vm1696_vm3 = vcmask 261312   ;;  %vm1915_vm4 = vcmask 1041409  }
  0x5f   : > { %v366_v12 = vld [vmem:[%s2781_s28 + $0x8] sm:$0xff]  ;;  %v373_v19 = vld [vmem:[%s2781_s28 + $0x40] sm:$0xff]  ;;  %v372_v20 = vld [vmem:[%s2781_s28 + $0x38] sm:$0xff]  ;;  %vm1917_vm5 = vcmask 1042434   ;;  %vm1919_vm6 = vcmask 1043459   ;;  %vm1921_vm7 = vcmask 1044484  }
  0x60   : > { %v371_v21 = vld [vmem:[%s2781_s28 + $0x30] sm:$0xff]  ;;  %v376_v28 = vld [vmem:[%s2781_s28 + $0x58] sm:$0xff]  ;;  %v374_v30 = vld [vmem:[%s2781_s28 + $0x48] sm:$0xff]  ;;  %vm1923_vm8 = vcmask 1045509   ;;  %vm1925_vm9 = vcmask 1046534   ;;  %vm1927_vm10 = vcmask 1047559  }
  0x61   : > { %v375_v29 = vld [vmem:[%s2781_s28 + $0x50] sm:$0xff]  ;;  %v378_v38 = vld [vmem:[%s2781_s28 + $0x68] sm:$0xff]  ;;  %v377_v39 = vld [vmem:[%s2781_s28 + $0x60] sm:$0xff]  ;;  %s4270_s10 = sld [smem:[#allocation19_spill]]  ;;  %vm1999_vm11 = vcmask 253952   ;;  %vm2004_vm12 = vcmask 0  }
  0x62   : > { %v379_v37 = vld [vmem:[%s2781_s28 + $0x70] sm:$0xff]  ;;  %v382_v46 = vld [vmem:[%s2781_s28 + $0x88] sm:$0xff]  ;;  %v381_v47 = vld [vmem:[%s2781_s28 + $0x80] sm:$0xff]  ;;  %s4271_s17 = sld [smem:[#allocation99_spill]] }
  0x63   : > { %s2804_s27 = scalar_lea.vmem %s318_s25, %s4126_s8 [#allocation9]  ;;  %v380_v48 = vld [vmem:[%s2781_s28 + $0x78] sm:$0xff]  ;;  %v385_v55 = vld [vmem:[%s2781_s28 + $0xa0] sm:$0xff]  ;;  %v383_v57 = vld [vmem:[%s2781_s28 + $0x90] sm:$0xff]  ;;  %s3154_s16 = scalar_lea.vmem %s308_s19, %s4126_s8 [#allocation8] }
  0x64   : > { %v2808_v1 = vld [vmem:[%s2804_s27] ss:$0 sm:$0xff]  ;;  %v384_v56 = vld [vmem:[%s2781_s28 + $0x98] sm:$0xff]  ;;  %s493_s9 = scalar_lea.vmem %s298_s2, %s4126_s8 [#allocation6] }
  0x65   : > { %v504_v4 = vmul.f32 %v2808_v1, %v369_v0  ;;  %v502_v5 = vmul.f32 %v2808_v1, %v367_v2  ;;  %v500_v6 = vmul.f32 %v2808_v1, %v365_v3  ;;  %v505_v13 = vmul.f32 %v2808_v1, %v370_v7  ;;  %v388_v0 = vld [vmem:[%s2781_s28 + $0xb8] sm:$0xff]  ;;  %v387_v2 = vld [vmem:[%s2781_s28 + $0xb0] sm:$0xff]  ;;  %v386_v3 = vld [vmem:[%s2781_s28 + $0xa8] sm:$0xff] }
  0x66   : > { %v503_v14 = vmul.f32 %v2808_v1, %v368_v8  ;;  %v501_v15 = vmul.f32 %v2808_v1, %v366_v12  ;;  %v508_v22 = vmul.f32 %v2808_v1, %v373_v19  ;;  %v507_v23 = vmul.f32 %v2808_v1, %v372_v20  ;;  %v389_v12 = vld [vmem:[%s2781_s28 + $0xc0] sm:$0xff]  ;;  %v394_v19 = vld [vmem:[%s2781_s28 + $0xe8] sm:$0xff] }
  0x67   : > { %v641_v9 = vsel %vm628_vm0, %v504_v4, 0.0  ;;  %v635_v10 = vsel %vm628_vm0, %v502_v5, 0.0  ;;  %v629_v11 = vsel %vm628_vm0, %v500_v6, 0.0  ;;  %v644_v16 = vsel %vm628_vm0, %v505_v13, 0.0  ;;  %v393_v20 = vld [vmem:[%s2781_s28 + $0xe0] sm:$0xff]  ;;  %p361_p7 = scmp.lt.s32.totalorder %s4270_s10, 1 }
  0x68   : > { %642 = vadd.xlane.f32.xlu2 %v641_v9  ;;  %636 = vadd.xlane.f32.xlu1 %v635_v10  ;;  %v638_v17 = vsel %vm628_vm0, %v503_v14, 0.0  ;;  %v632_v18 = vsel %vm628_vm0, %v501_v15, 0.0  ;;  %v506_v24 = vmul.f32 %v2808_v1, %v371_v21  ;;  %v653_v25 = vsel %vm628_vm0, %v508_v22, 0.0  ;;  %v391_v10 = vld [vmem:[%s2781_s28 + $0xd0] sm:$0xff]  ;;  %v392_v21 = vld [vmem:[%s2781_s28 + $0xd8] sm:$0xff] }
  0x69   : > { %630 = vadd.xlane.f32.xlu0 %v629_v11  ;;  %v650_v26 = vsel %vm628_vm0, %v507_v23, 0.0  ;;  %v511_v31 = vmul.f32 %v2808_v1, %v376_v28  ;;  %v510_v32 = vmul.f32 %v2808_v1, %v375_v29  ;;  %v509_v33 = vmul.f32 %v2808_v1, %v374_v30  ;;  %v390_v11 = vld [vmem:[%s2781_s28 + $0xc8] sm:$0xff]  ;;  %v397_v28 = vld [vmem:[%s2781_s28 + $0x100] sm:$0xff]  ;;  %v396_v29 = vld [vmem:[%s2781_s28 + $0xf8] sm:$0xff]  ;;  %s4298_s10 = smov (!%p361_p7, %s4270_s10), 1 }
  0x6a   : > { %v647_v27 = vsel %vm628_vm0, %v506_v24, 0.0  ;;  %v514_v40 = vmul.f32 %v2808_v1, %v379_v37  ;;  %v513_v41 = vmul.f32 %v2808_v1, %v378_v38  ;;  %v512_v42 = vmul.f32 %v2808_v1, %v377_v39  ;;  %v395_v30 = vld [vmem:[%s2781_s28 + $0xf0] sm:$0xff]  ;;  %v400_v37 = vld [vmem:[%s2781_s28 + $0x118] sm:$0xff]  ;;  %v398_v39 = vld [vmem:[%s2781_s28 + $0x108] sm:$0xff]  ;;  %s2173_s18 = sshll.u32 %s4298_s10, 3 }
  0x6b   : > { %v662_v34 = vsel %vm628_vm0, %v511_v31, 0.0  ;;  %v659_v35 = vsel %vm628_vm0, %v510_v32, 0.0  ;;  %v656_v36 = vsel %vm628_vm0, %v509_v33, 0.0  ;;  %v517_v49 = vmul.f32 %v2808_v1, %v382_v46  ;;  %v399_v38 = vld [vmem:[%s2781_s28 + $0x110] sm:$0xff]  ;;  %s364_s12 = scalar_lea.vmem %s4271_s17, %s2173_s18 }
  0x6c   : > { %v671_v43 = vsel %vm628_vm0, %v514_v40, 0.0  ;;  %v668_v44 = vsel %vm628_vm0, %v513_v41, 0.0  ;;  %v665_v45 = vsel %vm628_vm0, %v512_v42, 0.0  ;;  %v516_v50 = vmul.f32 %v2808_v1, %v381_v47  ;;  %v403_v46 = vld [vmem:[%s2781_s28 + $0x130] sm:$0xff]  ;;  %v402_v47 = vld [vmem:[%s2781_s28 + $0x128] sm:$0xff]  ;;  %s2003_s21 = scalar_lea.vmem %s364_s12, %s4126_s8 }
  0x6d   : > { %v515_v51 = vmul.f32 %v2808_v1, %v380_v48  ;;  %v680_v52 = vsel %vm628_vm0, %v517_v49, 0.0  ;;  %v520_v58 = vmul.f32 %v2808_v1, %v385_v55  ;;  %v519_v59 = vmul.f32 %v2808_v1, %v384_v56  ;;  %v401_v48 = vld [vmem:[%s2781_s28 + $0x120] sm:$0xff]  ;;  %v406_v55 = vld [vmem:[%s2781_s28 + $0x148] sm:$0xff] }
  0x6e   : > { %v677_v53 = vsel %vm628_vm0, %v516_v50, 0.0  ;;  %v518_v60 = vmul.f32 %v2808_v1, %v383_v57  ;;  %v523_v4 = vmul.f32 %v2808_v1, %v388_v0  ;;  %v522_v5 = vmul.f32 %v2808_v1, %v387_v2  ;;  %v405_v56 = vld [vmem:[%s2781_s28 + $0x140] sm:$0xff]  ;;  %v404_v57 = vld [vmem:[%s2781_s28 + $0x138] sm:$0xff] }
  0x6f   : > { %v674_v54 = vsel %vm628_vm0, %v515_v51, 0.0  ;;  %v689_v61 = vsel %vm628_vm0, %v520_v58, 0.0  ;;  %v686_v62 = vsel %vm628_vm0, %v519_v59, 0.0  ;;  %v521_v6 = vmul.f32 %v2808_v1, %v386_v3  ;;  %v409_v0 = vld [vmem:[%s2781_s28 + $0x160] sm:$0xff]  ;;  %v408_v2 = vld [vmem:[%s2781_s28 + $0x158] sm:$0xff]  ;;  %v407_v3 = vld [vmem:[%s2781_s28 + $0x150] sm:$0xff] }
  0x70   : > { %645 = vadd.xlane.f32.xlu2 %v644_v16  ;;  %639 = vadd.xlane.f32.xlu1 %v638_v17  ;;  %v683_v63 = vsel %vm628_vm0, %v518_v60, 0.0  ;;  %v698_v7 = vsel %vm628_vm0, %v523_v4, 0.0  ;;  %v695_v8 = vsel %vm628_vm0, %v522_v5, 0.0  ;;  %v526_v13 = vmul.f32 %v2808_v1, %v391_v10  ;;  %v412_v10 = vld [vmem:[%s2781_s28 + $0x178] sm:$0xff] }
  0x71   : > { %633 = vadd.xlane.f32.xlu0 %v632_v18  ;;  %v692_v9 = vsel %vm628_vm0, %v521_v6, 0.0  ;;  %v525_v14 = vmul.f32 %v2808_v1, %v390_v11  ;;  %v524_v15 = vmul.f32 %v2808_v1, %v389_v12  ;;  %v529_v22 = vmul.f32 %v2808_v1, %v394_v19  ;;  %v411_v11 = vld [vmem:[%s2781_s28 + $0x170] sm:$0xff]  ;;  %v410_v12 = vld [vmem:[%s2781_s28 + $0x168] sm:$0xff] }
  0x72   : > { %v707_v16 = vsel %vm628_vm0, %v526_v13, 0.0  ;;  %v528_v23 = vmul.f32 %v2808_v1, %v393_v20  ;;  %v527_v24 = vmul.f32 %v2808_v1, %v392_v21  ;;  %v532_v31 = vmul.f32 %v2808_v1, %v397_v28 }
  0x73   : > { %v704_v17 = vsel %vm628_vm0, %v525_v14, 0.0  ;;  %v701_v18 = vsel %vm628_vm0, %v524_v15, 0.0  ;;  %v531_v32 = vmul.f32 %v2808_v1, %v396_v29  ;;  %v530_v33 = vmul.f32 %v2808_v1, %v395_v30 }
  0x74   : > { %v535_v40 = vmul.f32 %v2808_v1, %v400_v37  ;;  %v534_v41 = vmul.f32 %v2808_v1, %v399_v38  ;;  %v533_v42 = vmul.f32 %v2808_v1, %v398_v39  ;;  %v538_v49 = vmul.f32 %v2808_v1, %v403_v46  ;;  %v421_v46 = vld [vmem:[%s2781_s28 + $0x1c0] sm:$0xff] }
  0x75   : > { %v537_v50 = vmul.f32 %v2808_v1, %v402_v47  ;;  %v536_v51 = vmul.f32 %v2808_v1, %v401_v48  ;;  %v541_v58 = vmul.f32 %v2808_v1, %v406_v55  ;;  %v540_v59 = vmul.f32 %v2808_v1, %v405_v56  ;;  %v420_v47 = vld [vmem:[%s2781_s28 + $0x1b8] sm:$0xff]  ;;  %v419_v48 = vld [vmem:[%s2781_s28 + $0x1b0] sm:$0xff] }
  0x76   : > { %v539_v60 = vmul.f32 %v2808_v1, %v404_v57  ;;  %v544_v4 = vmul.f32 %v2808_v1, %v409_v0  ;;  %v543_v5 = vmul.f32 %v2808_v1, %v408_v2  ;;  %v542_v6 = vmul.f32 %v2808_v1, %v407_v3 }
  0x77   : > { %v547_v13 = vmul.f32 %v2808_v1, %v412_v10  ;;  %v546_v14 = vmul.f32 %v2808_v1, %v411_v11  ;;  %v545_v15 = vmul.f32 %v2808_v1, %v410_v12 }
  0x78   : > { %654 = vadd.xlane.f32.xlu2 %v653_v25  ;;  %651 = vadd.xlane.f32.xlu1 %v650_v26  ;;  %v716_v25 = vsel %vm628_vm0, %v529_v22, 0.0  ;;  %v713_v26 = vsel %vm628_vm0, %v528_v23, 0.0  ;;  %v415_v22 = vld [vmem:[%s2781_s28 + $0x190] sm:$0xff]  ;;  %v414_v23 = vld [vmem:[%s2781_s28 + $0x188] sm:$0xff] }
  0x79   : > { %648 = vadd.xlane.f32.xlu0 %v647_v27  ;;  %v710_v27 = vsel %vm628_vm0, %v527_v24, 0.0  ;;  %v770_v19 = vsel %vm628_vm0, %v547_v13, 0.0  ;;  %v767_v20 = vsel %vm628_vm0, %v546_v14, 0.0  ;;  %v764_v21 = vsel %vm628_vm0, %v545_v15, 0.0  ;;  %v413_v24 = vld [vmem:[%s2781_s28 + $0x180] sm:$0xff] }
  0x80   : > { %663 = vadd.xlane.f32.xlu2 %v662_v34  ;;  %660 = vadd.xlane.f32.xlu1 %v659_v35  ;;  %v725_v34 = vsel %vm628_vm0, %v532_v31, 0.0  ;;  %v722_v35 = vsel %vm628_vm0, %v531_v32, 0.0 }
  0x81   : > { %657 = vadd.xlane.f32.xlu0 %v656_v36  ;;  %v719_v36 = vsel %vm628_vm0, %v530_v33, 0.0 }
  0x88   : > { %672 = vadd.xlane.f32.xlu2 %v671_v43  ;;  %669 = vadd.xlane.f32.xlu1 %v668_v44  ;;  %v734_v43 = vsel %vm628_vm0, %v535_v40, 0.0  ;;  %v731_v44 = vsel %vm628_vm0, %v534_v41, 0.0 }
  0x89   : > { %666 = vadd.xlane.f32.xlu0 %v665_v45  ;;  %v728_v45 = vsel %vm628_vm0, %v533_v42, 0.0 }
  0x90   : > { %681 = vadd.xlane.f32.xlu2 %v680_v52  ;;  %678 = vadd.xlane.f32.xlu1 %v677_v53  ;;  %v743_v52 = vsel %vm628_vm0, %v538_v49, 0.0  ;;  %v740_v53 = vsel %vm628_vm0, %v537_v50, 0.0  ;;  %v556_v49 = vmul.f32 %v2808_v1, %v421_v46  ;;  %v555_v50 = vmul.f32 %v2808_v1, %v420_v47 }
  0x91   : > { %675 = vadd.xlane.f32.xlu0 %v674_v54  ;;  %v737_v54 = vsel %vm628_vm0, %v536_v51, 0.0  ;;  %v554_v51 = vmul.f32 %v2808_v1, %v419_v48 }
  0x92   : > { %v797_v55 = vsel %vm628_vm0, %v556_v49, 0.0  ;;  %v794_v56 = vsel %vm628_vm0, %v555_v50, 0.0 }
  0x93   : > { %v791_v57 = vsel %vm628_vm0, %v554_v51, 0.0 }
  0x98   : > { %690 = vadd.xlane.f32.xlu2 %v689_v61  ;;  %687 = vadd.xlane.f32.xlu1 %v686_v62  ;;  %v752_v61 = vsel %vm628_vm0, %v541_v58, 0.0  ;;  %v749_v62 = vsel %vm628_vm0, %v540_v59, 0.0  ;;  %v424_v58 = vld [vmem:[%s2781_s28 + $0x1d8] sm:$0xff]  ;;  %v423_v59 = vld [vmem:[%s2781_s28 + $0x1d0] sm:$0xff] }
  0x99   : > { %684 = vadd.xlane.f32.xlu0 %v683_v63  ;;  %v746_v63 = vsel %vm628_vm0, %v539_v60, 0.0  ;;  %v422_v60 = vld [vmem:[%s2781_s28 + $0x1c8] sm:$0xff] }
  0xa0   : > { %699 = vadd.xlane.f32.xlu2 %v698_v7  ;;  %696 = vadd.xlane.f32.xlu1 %v695_v8  ;;  %v761_v7 = vsel %vm628_vm0, %v544_v4, 0.0  ;;  %v758_v8 = vsel %vm628_vm0, %v543_v5, 0.0 }
  0xa1   : > { %693 = vadd.xlane.f32.xlu0 %v692_v9  ;;  %v755_v9 = vsel %vm628_vm0, %v542_v6, 0.0 }
  0xa8   : > { %708 = vadd.xlane.f32.xlu2 %v707_v16  ;;  %705 = vadd.xlane.f32.xlu1 %v704_v17 }
  0xa9   : > { %702 = vadd.xlane.f32.xlu0 %v701_v18 }
  0xb0   : > { %717 = vadd.xlane.f32.xlu2 %v716_v25  ;;  %714 = vadd.xlane.f32.xlu1 %v713_v26  ;;  %v550_v25 = vmul.f32 %v2808_v1, %v415_v22  ;;  %v549_v26 = vmul.f32 %v2808_v1, %v414_v23  ;;  %v430_v22 = vld [vmem:[%s2781_s28 + $0x208] sm:$0xff]  ;;  %v429_v23 = vld [vmem:[%s2781_s28 + $0x200] sm:$0xff] }
  0xb1   : > { %711 = vadd.xlane.f32.xlu0 %v710_v27  ;;  %v548_v27 = vmul.f32 %v2808_v1, %v413_v24  ;;  %v428_v24 = vld [vmem:[%s2781_s28 + $0x1f8] sm:$0xff] }
  0xb2   : > { %v779_v31 = vsel %vm628_vm0, %v550_v25, 0.0  ;;  %v776_v32 = vsel %vm628_vm0, %v549_v26, 0.0  ;;  %v565_v25 = vmul.f32 %v2808_v1, %v430_v22  ;;  %v564_v26 = vmul.f32 %v2808_v1, %v429_v23 }
  0xb3   : > { %v773_v33 = vsel %vm628_vm0, %v548_v27, 0.0  ;;  %v563_v27 = vmul.f32 %v2808_v1, %v428_v24 }
  0xb8   : > { %726 = vadd.xlane.f32.xlu2 %v725_v34  ;;  %723 = vadd.xlane.f32.xlu1 %v722_v35  ;;  %v418_v34 = vld [vmem:[%s2781_s28 + $0x1a8] sm:$0xff]  ;;  %v417_v35 = vld [vmem:[%s2781_s28 + $0x1a0] sm:$0xff] }
  0xb9   : > { %720 = vadd.xlane.f32.xlu0 %v719_v36  ;;  %v416_v36 = vld [vmem:[%s2781_s28 + $0x198] sm:$0xff]  ;;  %v553_v37 = vmul.f32 %v2808_v1, %v418_v34  ;;  %v552_v38 = vmul.f32 %v2808_v1, %v417_v35  ;;  %v824_v34 = vsel %vm628_vm0, %v565_v25, 0.0  ;;  %v821_v35 = vsel %vm628_vm0, %v564_v26, 0.0  ;;  %v442_v25 = vld [vmem:[%s2781_s28 + $0x268] sm:$0xff]  ;;  %v441_v26 = vld [vmem:[%s2781_s28 + $0x260] sm:$0xff] }
  0xba   : > { %v551_v39 = vmul.f32 %v2808_v1, %v416_v36  ;;  %v818_v36 = vsel %vm628_vm0, %v563_v27, 0.0  ;;  %v440_v27 = vld [vmem:[%s2781_s28 + $0x258] sm:$0xff] }
  0xc0   : > { %735 = vadd.xlane.f32.xlu2 %v734_v43  ;;  %732 = vadd.xlane.f32.xlu1 %v731_v44  ;;  %v788_v43 = vsel %vm628_vm0, %v553_v37, 0.0  ;;  %v785_v44 = vsel %vm628_vm0, %v552_v38, 0.0  ;;  %v433_v37 = vld [vmem:[%s2781_s28 + $0x220] sm:$0xff]  ;;  %v432_v38 = vld [vmem:[%s2781_s28 + $0x218] sm:$0xff] }
  0xc1   : > { %729 = vadd.xlane.f32.xlu0 %v728_v45  ;;  %v782_v45 = vsel %vm628_vm0, %v551_v39, 0.0  ;;  %v431_v39 = vld [vmem:[%s2781_s28 + $0x210] sm:$0xff] }
  0xc8   : > { %744 = vadd.xlane.f32.xlu2 %v743_v52  ;;  %741 = vadd.xlane.f32.xlu1 %v740_v53 }
  0xc9   : > { %738 = vadd.xlane.f32.xlu0 %v737_v54 }
  0xd0   : > { %753 = vadd.xlane.f32.xlu2 %v752_v61  ;;  %750 = vadd.xlane.f32.xlu1 %v749_v62  ;;  %v559_v61 = vmul.f32 %v2808_v1, %v424_v58  ;;  %v558_v62 = vmul.f32 %v2808_v1, %v423_v59 }
  0xd1   : > { %747 = vadd.xlane.f32.xlu0 %v746_v63  ;;  %v557_v63 = vmul.f32 %v2808_v1, %v422_v60 }
  0xd2   : > { %v806_v4 = vsel %vm628_vm0, %v559_v61, 0.0  ;;  %v803_v5 = vsel %vm628_vm0, %v558_v62, 0.0 }
  0xd3   : > { %v800_v6 = vsel %vm628_vm0, %v557_v63, 0.0 }
  0xd8   : > { %762 = vadd.xlane.f32.xlu2 %v761_v7  ;;  %759 = vadd.xlane.f32.xlu1 %v758_v8  ;;  %v427_v7 = vld [vmem:[%s2781_s28 + $0x1f0] sm:$0xff]  ;;  %v426_v8 = vld [vmem:[%s2781_s28 + $0x1e8] sm:$0xff] }
  0xd9   : > { %756 = vadd.xlane.f32.xlu0 %v755_v9  ;;  %v425_v9 = vld [vmem:[%s2781_s28 + $0x1e0] sm:$0xff]  ;;  %v562_v10 = vmul.f32 %v2808_v1, %v427_v7  ;;  %v561_v11 = vmul.f32 %v2808_v1, %v426_v8  ;;  %v439_v7 = vld [vmem:[%s2781_s28 + $0x250] sm:$0xff]  ;;  %v438_v8 = vld [vmem:[%s2781_s28 + $0x248] sm:$0xff] }
  0xda   : > { %v560_v12 = vmul.f32 %v2808_v1, %v425_v9  ;;  %v437_v9 = vld [vmem:[%s2781_s28 + $0x240] sm:$0xff] }
  0xdb   : > { %v2950_v16 = vpop.xlane.xlu2 %642  ;;  %v2952_v17 = vpop.xlane.xlu1 %636 }
  0xdc   : > { %v2954_v18 = vpop.xlane.xlu0 %630 }
  0xe0   : > { %771 = vadd.xlane.f32.xlu2 %v770_v19  ;;  %768 = vadd.xlane.f32.xlu1 %v767_v20  ;;  %v815_v19 = vsel %vm628_vm0, %v562_v10, 0.0  ;;  %v812_v20 = vsel %vm628_vm0, %v561_v11, 0.0  ;;  %v574_v10 = vmul.f32 %v2808_v1, %v439_v7  ;;  %v573_v11 = vmul.f32 %v2808_v1, %v438_v8  ;;  %v448_v7 = vld [vmem:[%s2781_s28 + $0x298] sm:$0xff]  ;;  %v447_v8 = vld [vmem:[%s2781_s28 + $0x290] sm:$0xff] }
  0xe1   : > { %765 = vadd.xlane.f32.xlu0 %v764_v21  ;;  %v809_v21 = vsel %vm628_vm0, %v560_v12, 0.0  ;;  %v572_v12 = vmul.f32 %v2808_v1, %v437_v9  ;;  %v446_v9 = vld [vmem:[%s2781_s28 + $0x288] sm:$0xff] }
  0xe2   : > { %v851_v22 = vsel %vm628_vm0, %v574_v10, 0.0  ;;  %v848_v23 = vsel %vm628_vm0, %v573_v11, 0.0  ;;  %v583_v10 = vmul.f32 %v2808_v1, %v448_v7  ;;  %v582_v11 = vmul.f32 %v2808_v1, %v447_v8 }
  0xe3   : > { %v2965_v28 = vpop.xlane.xlu2 %645  ;;  %v2967_v29 = vpop.xlane.xlu1 %639  ;;  %v845_v24 = vsel %vm628_vm0, %v572_v12, 0.0  ;;  %v581_v12 = vmul.f32 %v2808_v1, %v446_v9 }
  0xe4   : > { %v2969_v30 = vpop.xlane.xlu0 %633 }
  0xe8   : > { %780 = vadd.xlane.f32.xlu2 %v779_v31  ;;  %777 = vadd.xlane.f32.xlu1 %v776_v32 }
  0xe9   : > { %774 = vadd.xlane.f32.xlu0 %v773_v33 }
  0xeb   : > { %v2980_v40 = vpop.xlane.xlu2 %654  ;;  %v2982_v41 = vpop.xlane.xlu1 %651 }
  0xec   : > { %v2984_v42 = vpop.xlane.xlu0 %648 }
  0xf0   : > { %789 = vadd.xlane.f32.xlu2 %v788_v43  ;;  %786 = vadd.xlane.f32.xlu1 %v785_v44  ;;  %v568_v43 = vmul.f32 %v2808_v1, %v433_v37  ;;  %v567_v44 = vmul.f32 %v2808_v1, %v432_v38 }
  0xf1   : > { %783 = vadd.xlane.f32.xlu0 %v782_v45  ;;  %v566_v45 = vmul.f32 %v2808_v1, %v431_v39 }
  0xf2   : > { %v833_v49 = vsel %vm628_vm0, %v568_v43, 0.0  ;;  %v830_v50 = vsel %vm628_vm0, %v567_v44, 0.0 }
  0xf3   : > { %v2995_v52 = vpop.xlane.xlu2 %663  ;;  %v2997_v53 = vpop.xlane.xlu1 %660  ;;  %v827_v51 = vsel %vm628_vm0, %v566_v45, 0.0 }
  0xf4   : > { %v2999_v54 = vpop.xlane.xlu0 %657 }
  0xf8   : > { %798 = vadd.xlane.f32.xlu2 %v797_v55  ;;  %795 = vadd.xlane.f32.xlu1 %v794_v56  ;;  %v436_v55 = vld [vmem:[%s2781_s28 + $0x238] sm:$0xff]  ;;  %v435_v56 = vld [vmem:[%s2781_s28 + $0x230] sm:$0xff] }
  0xf9   : > { %792 = vadd.xlane.f32.xlu0 %v791_v57  ;;  %v434_v57 = vld [vmem:[%s2781_s28 + $0x228] sm:$0xff]  ;;  %v571_v58 = vmul.f32 %v2808_v1, %v436_v55  ;;  %v570_v59 = vmul.f32 %v2808_v1, %v435_v56 }
  0xfa   : > { %v569_v60 = vmul.f32 %v2808_v1, %v434_v57 }
  0xfb   : > { %v3010_v0 = vpop.xlane.xlu2 %672  ;;  %v3012_v2 = vpop.xlane.xlu1 %669 }
  0xfc   : > { %v3014_v3 = vpop.xlane.xlu0 %666 }
 0x100   : > { %807 = vadd.xlane.f32.xlu2 %v806_v4  ;;  %804 = vadd.xlane.f32.xlu1 %v803_v5  ;;  %v842_v4 = vsel %vm628_vm0, %v571_v58, 0.0  ;;  %v839_v5 = vsel %vm628_vm0, %v570_v59, 0.0 }
 0x101   : > { %801 = vadd.xlane.f32.xlu0 %v800_v6  ;;  %v836_v6 = vsel %vm628_vm0, %v569_v60, 0.0 }
 0x103   : > { %v3025_v13 = vpop.xlane.xlu2 %681  ;;  %v3027_v14 = vpop.xlane.xlu1 %678 }
 0x104   : > { %v3029_v15 = vpop.xlane.xlu0 %675 }
 0x108   : > { %816 = vadd.xlane.f32.xlu2 %v815_v19  ;;  %813 = vadd.xlane.f32.xlu1 %v812_v20 }
 0x109   : > { %810 = vadd.xlane.f32.xlu0 %v809_v21 }
 0x10b   : > { %v3040_v31 = vpop.xlane.xlu2 %690  ;;  %v3042_v32 = vpop.xlane.xlu1 %687 }
 0x10c   : > { %v3044_v33 = vpop.xlane.xlu0 %684 }
 0x110   : > { %825 = vadd.xlane.f32.xlu2 %v824_v34  ;;  %822 = vadd.xlane.f32.xlu1 %v821_v35  ;;  %v577_v34 = vmul.f32 %v2808_v1, %v442_v25  ;;  %v576_v35 = vmul.f32 %v2808_v1, %v441_v26  ;;  %v878_v25 = vsel %vm628_vm0, %v583_v10, 0.0  ;;  %v875_v26 = vsel %vm628_vm0, %v582_v11, 0.0 }
 0x111   : > { %819 = vadd.xlane.f32.xlu0 %v818_v36  ;;  %v575_v36 = vmul.f32 %v2808_v1, %v440_v27  ;;  %v872_v27 = vsel %vm628_vm0, %v581_v12, 0.0 }
 0x112   : > { %v860_v43 = vsel %vm628_vm0, %v577_v34, 0.0  ;;  %v857_v44 = vsel %vm628_vm0, %v576_v35, 0.0  ;;  %v451_v34 = vld [vmem:[%s2781_s28 + $0x2b0] sm:$0xff]  ;;  %v450_v35 = vld [vmem:[%s2781_s28 + $0x2a8] sm:$0xff] }
 0x113   : > { %v3055_v46 = vpop.xlane.xlu2 %699  ;;  %v3057_v47 = vpop.xlane.xlu1 %696  ;;  %v854_v45 = vsel %vm628_vm0, %v575_v36, 0.0  ;;  %v449_v36 = vld [vmem:[%s2781_s28 + $0x2a0] sm:$0xff] }
 0x114   : > { %v3059_v48 = vpop.xlane.xlu0 %693 }
 0x118   : > { %834 = vadd.xlane.f32.xlu2 %v833_v49  ;;  %831 = vadd.xlane.f32.xlu1 %v830_v50  ;;  %v445_v49 = vld [vmem:[%s2781_s28 + $0x280] sm:$0xff]  ;;  %v444_v50 = vld [vmem:[%s2781_s28 + $0x278] sm:$0xff] }
 0x119   : > { %828 = vadd.xlane.f32.xlu0 %v827_v51  ;;  %v443_v51 = vld [vmem:[%s2781_s28 + $0x270] sm:$0xff]  ;;  %v580_v55 = vmul.f32 %v2808_v1, %v445_v49  ;;  %v579_v56 = vmul.f32 %v2808_v1, %v444_v50 }
 0x11a   : > { %v578_v57 = vmul.f32 %v2808_v1, %v443_v51 }
 0x11b   : > { %v3070_v61 = vpop.xlane.xlu2 %708  ;;  %v3072_v62 = vpop.xlane.xlu1 %705 }
 0x11c   : > { %v3074_v63 = vpop.xlane.xlu0 %702 }
 0x120   : > { %843 = vadd.xlane.f32.xlu2 %v842_v4  ;;  %840 = vadd.xlane.f32.xlu1 %v839_v5  ;;  %v869_v4 = vsel %vm628_vm0, %v580_v55, 0.0  ;;  %v866_v5 = vsel %vm628_vm0, %v579_v56, 0.0 }
 0x121   : > { %837 = vadd.xlane.f32.xlu0 %v836_v6  ;;  %v863_v6 = vsel %vm628_vm0, %v578_v57, 0.0 }
 0x123   : > { %v3085_v19 = vpop.xlane.xlu2 %717  ;;  %v3087_v20 = vpop.xlane.xlu1 %714 }
 0x124   : > { %v3089_v21 = vpop.xlane.xlu0 %711 }
 0x128   : > { %852 = vadd.xlane.f32.xlu2 %v851_v22  ;;  %849 = vadd.xlane.f32.xlu1 %v848_v23 }
 0x129   : > { %846 = vadd.xlane.f32.xlu0 %v845_v24 }
 0x12b   : > { %v3100_v37 = vpop.xlane.xlu2 %726  ;;  %v3102_v38 = vpop.xlane.xlu1 %723 }
 0x12c   : > { %v3104_v39 = vpop.xlane.xlu0 %720 }
 0x130   : > { %861 = vadd.xlane.f32.xlu2 %v860_v43  ;;  %858 = vadd.xlane.f32.xlu1 %v857_v44  ;;  %v586_v43 = vmul.f32 %v2808_v1, %v451_v34  ;;  %v585_v44 = vmul.f32 %v2808_v1, %v450_v35  ;;  %v457_v34 = vld [vmem:[%s2781_s28 + $0x2e0] sm:$0xff]  ;;  %v456_v35 = vld [vmem:[%s2781_s28 + $0x2d8] sm:$0xff] }
 0x131   : > { %855 = vadd.xlane.f32.xlu0 %v854_v45  ;;  %v584_v45 = vmul.f32 %v2808_v1, %v449_v36  ;;  %v455_v36 = vld [vmem:[%s2781_s28 + $0x2d0] sm:$0xff] }
 0x132   : > { %v887_v55 = vsel %vm628_vm0, %v586_v43, 0.0  ;;  %v884_v56 = vsel %vm628_vm0, %v585_v44, 0.0  ;;  %v592_v43 = vmul.f32 %v2808_v1, %v457_v34  ;;  %v591_v44 = vmul.f32 %v2808_v1, %v456_v35 }
 0x133   : > { %v3115_v58 = vpop.xlane.xlu2 %735  ;;  %v3117_v59 = vpop.xlane.xlu1 %732  ;;  %v881_v57 = vsel %vm628_vm0, %v584_v45, 0.0  ;;  %v590_v45 = vmul.f32 %v2808_v1, %v455_v36 }
 0x134   : > { %v3119_v60 = vpop.xlane.xlu0 %729 }
 0x138   : > { %870 = vadd.xlane.f32.xlu2 %v869_v4  ;;  %867 = vadd.xlane.f32.xlu1 %v866_v5  ;;  %v454_v4 = vld [vmem:[%s2781_s28 + $0x2c8] sm:$0xff]  ;;  %v453_v5 = vld [vmem:[%s2781_s28 + $0x2c0] sm:$0xff] }
 0x139   : > { %864 = vadd.xlane.f32.xlu0 %v863_v6  ;;  %v452_v6 = vld [vmem:[%s2781_s28 + $0x2b8] sm:$0xff]  ;;  %v589_v7 = vmul.f32 %v2808_v1, %v454_v4  ;;  %v588_v8 = vmul.f32 %v2808_v1, %v453_v5  ;;  %v905_v4 = vsel %vm628_vm0, %v592_v43, 0.0  ;;  %v902_v5 = vsel %vm628_vm0, %v591_v44, 0.0 }
 0x13a   : > { %v587_v9 = vmul.f32 %v2808_v1, %v452_v6  ;;  %v899_v6 = vsel %vm628_vm0, %v590_v45, 0.0 }
 0x13b   : > { %v3130_v22 = vpop.xlane.xlu2 %744  ;;  %v3132_v23 = vpop.xlane.xlu1 %741 }
 0x13c   : > { %v3134_v24 = vpop.xlane.xlu0 %738 }
 0x140   : > { %879 = vadd.xlane.f32.xlu2 %v878_v25  ;;  %876 = vadd.xlane.f32.xlu1 %v875_v26  ;;  %v896_v25 = vsel %vm628_vm0, %v589_v7, 0.0  ;;  %v893_v26 = vsel %vm628_vm0, %v588_v8, 0.0  ;;  %v460_v7 = vld [vmem:[%s2781_s28 + $0x2f8] sm:$0xff]  ;;  %v459_v8 = vld [vmem:[%s2781_s28 + $0x2f0] sm:$0xff] }
 0x141   : > { %873 = vadd.xlane.f32.xlu0 %v872_v27  ;;  %v890_v27 = vsel %vm628_vm0, %v587_v9, 0.0  ;;  %v458_v9 = vld [vmem:[%s2781_s28 + $0x2e8] sm:$0xff] }
 0x143   : > { %v3145_v49 = vpop.xlane.xlu2 %753  ;;  %v3147_v50 = vpop.xlane.xlu1 %750 }
 0x144   : > { %v3149_v51 = vpop.xlane.xlu0 %747 }
 0x148   : > { %888 = vadd.xlane.f32.xlu2 %v887_v55  ;;  %885 = vadd.xlane.f32.xlu1 %v884_v56 }
 0x149   : > { %882 = vadd.xlane.f32.xlu0 %v881_v57 }
 0x14b   : > { %v3165_v10 = vpop.xlane.xlu2 %762  ;;  %v3167_v11 = vpop.xlane.xlu1 %759 }
 0x14c   : > { %4127 = vst [vmem:[#allocation27_spill] sm:$0xff] %v3165_v10  ;;  %v3169_v12 = vpop.xlane.xlu0 %756  ;;  %v486_v10 = vld [vmem:[%s2781_s28 + $0x3c8] sm:$0xff] }
 0x150   : > { %897 = vadd.xlane.f32.xlu2 %v896_v25  ;;  %894 = vadd.xlane.f32.xlu1 %v893_v26  ;;  %v595_v25 = vmul.f32 %v2808_v1, %v460_v7  ;;  %v594_v26 = vmul.f32 %v2808_v1, %v459_v8 }
 0x151   : > { %891 = vadd.xlane.f32.xlu0 %v890_v27  ;;  %v593_v27 = vmul.f32 %v2808_v1, %v458_v9 }
 0x152   : > { %v914_v43 = vsel %vm628_vm0, %v595_v25, 0.0  ;;  %v911_v44 = vsel %vm628_vm0, %v594_v26, 0.0 }
 0x153   : > { %v3180_v55 = vpop.xlane.xlu2 %771  ;;  %v3182_v56 = vpop.xlane.xlu1 %768  ;;  %v908_v45 = vsel %vm628_vm0, %v593_v27, 0.0 }
 0x154   : > { %4128 = vst [vmem:[#allocation28_spill] sm:$0xff] %v3180_v55  ;;  %v3184_v57 = vpop.xlane.xlu0 %765 }
 0x155   : > { %4129 = vst [vmem:[#allocation29_spill] sm:$0xff] %v3182_v56 }
 0x158   : > { %906 = vadd.xlane.f32.xlu2 %v905_v4  ;;  %903 = vadd.xlane.f32.xlu1 %v902_v5  ;;  %v463_v4 = vld [vmem:[%s2781_s28 + $0x310] sm:$0xff]  ;;  %v462_v5 = vld [vmem:[%s2781_s28 + $0x308] sm:$0xff] }
 0x159   : > { %900 = vadd.xlane.f32.xlu0 %v899_v6  ;;  %v461_v6 = vld [vmem:[%s2781_s28 + $0x300] sm:$0xff]  ;;  %v598_v7 = vmul.f32 %v2808_v1, %v463_v4  ;;  %v597_v8 = vmul.f32 %v2808_v1, %v462_v5  ;;  %v464_v4 = vld [vmem:[%s2781_s28 + $0x318] sm:$0xff] }
 0x15a   : > { %v596_v9 = vmul.f32 %v2808_v1, %v461_v6 }
 0x15b   : > { %v3195_v34 = vpop.xlane.xlu2 %780  ;;  %v3197_v35 = vpop.xlane.xlu1 %777 }
 0x15c   : > { %4130 = vst [vmem:[#allocation30_spill] sm:$0xff] %v3195_v34  ;;  %v3199_v36 = vpop.xlane.xlu0 %774  ;;  %v923_v34 = vsel %vm628_vm0, %v598_v7, 0.0 }
 0x15d   : > { %4131 = vst [vmem:[#allocation31_spill] sm:$0xff] %v3197_v35  ;;  %v920_v35 = vsel %vm628_vm0, %v597_v8, 0.0 }
 0x160   : > { %915 = vadd.xlane.f32.xlu2 %v914_v43  ;;  %912 = vadd.xlane.f32.xlu1 %v911_v44  ;;  %v917_v43 = vsel %vm628_vm0, %v596_v9, 0.0  ;;  %v466_v44 = vld [vmem:[%s2781_s28 + $0x328] sm:$0xff] }
 0x161   : > { %909 = vadd.xlane.f32.xlu0 %v908_v45  ;;  %v465_v45 = vld [vmem:[%s2781_s28 + $0x320] sm:$0xff]  ;;  %v601_v5 = vmul.f32 %v2808_v1, %v466_v44  ;;  %v467_v44 = vld [vmem:[%s2781_s28 + $0x330] sm:$0xff] }
 0x162   : > { %v600_v6 = vmul.f32 %v2808_v1, %v465_v45 }
 0x163   : > { %v3210_v25 = vpop.xlane.xlu2 %789  ;;  %v3212_v26 = vpop.xlane.xlu1 %786 }
 0x164   : > { %4132 = vst [vmem:[#allocation32_spill] sm:$0xff] %v3210_v25  ;;  %v3214_v27 = vpop.xlane.xlu0 %783  ;;  %v599_v25 = vmul.f32 %v2808_v1, %v464_v4  ;;  %v929_v55 = vsel %vm628_vm0, %v600_v6, 0.0 }
 0x165   : > { %4133 = vst [vmem:[#allocation33_spill] sm:$0xff] %v3212_v26  ;;  %v932_v26 = vsel %vm628_vm0, %v601_v5, 0.0 }
 0x168   : > { %924 = vadd.xlane.f32.xlu2 %v923_v34  ;;  %921 = vadd.xlane.f32.xlu1 %v920_v35  ;;  %v926_v34 = vsel %vm628_vm0, %v599_v25, 0.0  ;;  %v469_v35 = vld [vmem:[%s2781_s28 + $0x340] sm:$0xff] }
 0x169   : > { %918 = vadd.xlane.f32.xlu0 %v917_v43  ;;  %v468_v43 = vld [vmem:[%s2781_s28 + $0x338] sm:$0xff]  ;;  %v604_v45 = vmul.f32 %v2808_v1, %v469_v35  ;;  %v470_v35 = vld [vmem:[%s2781_s28 + $0x348] sm:$0xff] }
 0x16a   : > { %v603_v4 = vmul.f32 %v2808_v1, %v468_v43 }
 0x16b   : > { %v3225_v7 = vpop.xlane.xlu2 %798  ;;  %v3227_v8 = vpop.xlane.xlu1 %795 }
 0x16c   : > { %4134 = vst [vmem:[#allocation34_spill] sm:$0xff] %v3225_v7  ;;  %v3229_v9 = vpop.xlane.xlu0 %792  ;;  %v602_v7 = vmul.f32 %v2808_v1, %v467_v44  ;;  %v938_v56 = vsel %vm628_vm0, %v603_v4, 0.0 }
 0x16d   : > { %4135 = vst [vmem:[#allocation35_spill] sm:$0xff] %v3227_v8  ;;  %v941_v8 = vsel %vm628_vm0, %v604_v45, 0.0 }
 0x170   : > { %933 = vadd.xlane.f32.xlu2 %v932_v26  ;;  %930 = vadd.xlane.f32.xlu1 %v929_v55  ;;  %v935_v26 = vsel %vm628_vm0, %v602_v7, 0.0  ;;  %v472_v55 = vld [vmem:[%s2781_s28 + $0x358] sm:$0xff] }
 0x171   : > { %927 = vadd.xlane.f32.xlu0 %v926_v34  ;;  %v471_v34 = vld [vmem:[%s2781_s28 + $0x350] sm:$0xff]  ;;  %v607_v43 = vmul.f32 %v2808_v1, %v472_v55  ;;  %v473_v55 = vld [vmem:[%s2781_s28 + $0x360] sm:$0xff] }
 0x172   : > { %v606_v44 = vmul.f32 %v2808_v1, %v471_v34 }
 0x173   : > { %v3240_v5 = vpop.xlane.xlu2 %807  ;;  %v3242_v6 = vpop.xlane.xlu1 %804 }
 0x174   : > { %4136 = vst [vmem:[#allocation36_spill] sm:$0xff] %v3240_v5  ;;  %v3244_v25 = vpop.xlane.xlu0 %801  ;;  %v605_v5 = vmul.f32 %v2808_v1, %v470_v35 }
 0x175   : > { %4137 = vst [vmem:[#allocation37_spill] sm:$0xff] %v3242_v6  ;;  %v950_v6 = vsel %vm628_vm0, %v607_v43, 0.0  ;;  %v608_v43 = vmul.f32 %v2808_v1, %v473_v55 }
 0x176   : > { %4138 = vst [vmem:[#allocation38_spill] sm:$0xff] %v3244_v25  ;;  %v947_v25 = vsel %vm628_vm0, %v606_v44, 0.0 }
 0x178   : > { %942 = vadd.xlane.f32.xlu2 %v941_v8  ;;  %939 = vadd.xlane.f32.xlu1 %v938_v56  ;;  %v944_v8 = vsel %vm628_vm0, %v605_v5, 0.0  ;;  %v475_v56 = vld [vmem:[%s2781_s28 + $0x370] sm:$0xff] }
 0x179   : > { %936 = vadd.xlane.f32.xlu0 %v935_v26  ;;  %v474_v26 = vld [vmem:[%s2781_s28 + $0x368] sm:$0xff]  ;;  %v610_v34 = vmul.f32 %v2808_v1, %v475_v56  ;;  %v476_v56 = vld [vmem:[%s2781_s28 + $0x378] sm:$0xff] }
 0x17a   : > { %v609_v35 = vmul.f32 %v2808_v1, %v474_v26  ;;  %v3283_v1 = vld [vmem:[%s2804_s27] ss:$0 sm:$0xff] }
 0x17b   : > { %v3255_v45 = vpop.xlane.xlu2 %816  ;;  %v3257_v4 = vpop.xlane.xlu1 %813 }
 0x17c   : > { %4139 = vst [vmem:[#allocation39_spill] sm:$0xff] %v3255_v45  ;;  %v3259_v7 = vpop.xlane.xlu0 %810 }
 0x17d   : > { %4140 = vst [vmem:[#allocation40_spill] sm:$0xff] %v3257_v4  ;;  %v959_v4 = vsel %vm628_vm0, %v610_v34, 0.0  ;;  %v611_v34 = vmul.f32 %v3283_v1, %v476_v56 }
 0x17e   : > { %4141 = vst [vmem:[#allocation41_spill] sm:$0xff] %v3259_v7  ;;  %v956_v7 = vsel %vm628_vm0, %v609_v35, 0.0 }
 0x180   : > { %951 = vadd.xlane.f32.xlu2 %v950_v6  ;;  %948 = vadd.xlane.f32.xlu1 %v947_v25  ;;  %v953_v6 = vsel %vm628_vm0, %v608_v43, 0.0  ;;  %v478_v25 = vld [vmem:[%s2781_s28 + $0x388] sm:$0xff] }
 0x181   : > { %945 = vadd.xlane.f32.xlu0 %v944_v8  ;;  %v477_v8 = vld [vmem:[%s2781_s28 + $0x380] sm:$0xff]  ;;  %v613_v26 = vmul.f32 %v3283_v1, %v478_v25  ;;  %v480_v25 = vld [vmem:[%s2781_s28 + $0x398] sm:$0xff] }
 0x182   : > { %v612_v55 = vmul.f32 %v3283_v1, %v477_v8  ;;  %v479_v8 = vld [vmem:[%s2781_s28 + $0x390] sm:$0xff] }
 0x183   : > { %v3270_v45 = vpop.xlane.xlu2 %825  ;;  %v3272_v44 = vpop.xlane.xlu1 %822 }
 0x184   : > { %4142 = vst [vmem:[#allocation42_spill] sm:$0xff] %v3270_v45  ;;  %v3274_v5 = vpop.xlane.xlu0 %819 }
 0x185   : > { %4143 = vst [vmem:[#allocation43_spill] sm:$0xff] %v3272_v44  ;;  %v968_v44 = vsel %vm628_vm0, %v613_v26, 0.0 }
 0x186   : > { %4144 = vst [vmem:[#allocation44_spill] sm:$0xff] %v3274_v5 }
 0x188   : > { %960 = vadd.xlane.f32.xlu2 %v959_v4  ;;  %957 = vadd.xlane.f32.xlu1 %v956_v7  ;;  %v965_v4 = vsel %vm628_vm0, %v612_v55, 0.0  ;;  %v962_v7 = vsel %vm628_vm0, %v611_v34, 0.0 }
 0x189   : > { %954 = vadd.xlane.f32.xlu0 %v953_v6  ;;  %v481_v6 = vld [vmem:[%s2781_s28 + $0x3a0] sm:$0xff] }
 0x18a   : > { %v616_v56 = vmul.f32 %v3283_v1, %v481_v6  ;;  %v482_v6 = vld [vmem:[%s2781_s28 + $0x3a8] sm:$0xff] }
 0x18b   : > { %v3288_v35 = vpop.xlane.xlu2 %834  ;;  %v3290_v43 = vpop.xlane.xlu1 %831 }
 0x18c   : > { %4145 = vst [vmem:[#allocation45_spill] sm:$0xff] %v3288_v35  ;;  %v3292_v45 = vpop.xlane.xlu0 %828  ;;  %v615_v35 = vmul.f32 %v3283_v1, %v480_v25 }
 0x18d   : > { %4146 = vst [vmem:[#allocation46_spill] sm:$0xff] %v3290_v43  ;;  %v614_v43 = vmul.f32 %v3283_v1, %v479_v8 }
 0x18e   : > { %4147 = vst [vmem:[#allocation47_spill] sm:$0xff] %v3292_v45  ;;  %v977_v45 = vsel %vm628_vm0, %v616_v56, 0.0  ;;  %v974_v5 = vsel %vm628_vm0, %v615_v35, 0.0 }
 0x190   : > { %969 = vadd.xlane.f32.xlu2 %v968_v44  ;;  %966 = vadd.xlane.f32.xlu1 %v965_v4  ;;  %v971_v44 = vsel %vm628_vm0, %v614_v43, 0.0  ;;  %v484_v4 = vld [vmem:[%s2781_s28 + $0x3b8] sm:$0xff] }
 0x191   : > { %963 = vadd.xlane.f32.xlu0 %v962_v7  ;;  %v483_v7 = vld [vmem:[%s2781_s28 + $0x3b0] sm:$0xff]  ;;  %v619_v25 = vmul.f32 %v3283_v1, %v484_v4 }
 0x192   : > { %v618_v8 = vmul.f32 %v3283_v1, %v483_v7  ;;  %v485_v7 = vld [vmem:[%s2781_s28 + $0x3c0] sm:$0xff] }
 0x193   : > { %v3303_v26 = vpop.xlane.xlu2 %843  ;;  %v3305_v55 = vpop.xlane.xlu1 %840 }
 0x194   : > { %4148 = vst [vmem:[#allocation48_spill] sm:$0xff] %v3303_v26  ;;  %v3307_v34 = vpop.xlane.xlu0 %837  ;;  %v617_v26 = vmul.f32 %v3283_v1, %v482_v6 }
 0x195   : > { %4149 = vst [vmem:[#allocation49_spill] sm:$0xff] %v3305_v55  ;;  %v4100_v55 = vlaneseq }
 0x196   : > { %4150 = vst [vmem:[#allocation50_spill] sm:$0xff] %v3307_v34  ;;  %v986_v34 = vsel %vm628_vm0, %v619_v25, 0.0  ;;  %v620_v25 = vmul.f32 %v3283_v1, %v485_v7  ;;  %v488_v7 = vld [vmem:[%s2781_s28 + $0x3d8] sm:$0xff] }
 0x197   : > { %v1016_v4 = vshrl.u32 %v4100_v55, 7 }
 0x198   : > { %978 = vadd.xlane.f32.xlu2 %v977_v45  ;;  %975 = vadd.xlane.f32.xlu1 %v974_v5  ;;  %v983_v45 = vsel %vm628_vm0, %v618_v8, 0.0  ;;  %v980_v5 = vsel %vm628_vm0, %v617_v26, 0.0 }
 0x199   : > { %972 = vadd.xlane.f32.xlu0 %v971_v44  ;;  %v487_v44 = vld [vmem:[%s2781_s28 + $0x3d0] sm:$0xff]  ;;  %2296 = vset.pattern.permute.xlu2 %v1016_v4 }
 0x19a   : > { %v622_v6 = vmul.f32 %v3283_v1, %v487_v44  ;;  %v989_v44 = vsel %vm628_vm0, %v620_v25, 0.0 }
 0x19b   : > { %v3318_v56 = vpop.xlane.xlu2 %852  ;;  %v3320_v35 = vpop.xlane.xlu1 %849 }
 0x19c   : > { %4151 = vst [vmem:[#allocation51_spill] sm:$0xff] %v3318_v56  ;;  %v3322_v43 = vpop.xlane.xlu0 %846  ;;  %v621_v56 = vmul.f32 %v3283_v1, %v486_v10  ;;  %v489_v10 = vld [vmem:[%s2781_s28 + $0x3e0] sm:$0xff] }
 0x19d   : > { %4152 = vst [vmem:[#allocation52_spill] sm:$0xff] %v3320_v35  ;;  %v1023_v35 = vadd.s32 8, %v1016_v4 }
 0x19e   : > { %4153 = vst [vmem:[#allocation53_spill] sm:$0xff] %v3322_v43  ;;  %v490_v43 = vld [vmem:[%s2781_s28 + $0x3e8] sm:$0xff] }
 0x19f   : > { %2297 = vset.pattern.permute.xlu0 %v1023_v35 }
 0x1a0   : > { %987 = vadd.xlane.f32.xlu2 %v986_v34  ;;  %984 = vadd.xlane.f32.xlu1 %v983_v45  ;;  %v1029_v34 = vadd.s32 16, %v1016_v4  ;;  %v995_v45 = vsel %vm628_vm0, %v622_v6, 0.0  ;;  %v623_v6 = vmul.f32 %v3283_v1, %v488_v7 }
 0x1a1   : > { %981 = vadd.xlane.f32.xlu0 %v980_v5  ;;  %v992_v5 = vsel %vm628_vm0, %v621_v56, 0.0 }
 0x1a2   : > { %2298 = vset.pattern.permute.xlu1 %v1029_v34 }
 0x1a3   : > { %v3334_v8 = vpop.xlane.xlu2 %861  ;;  %v3336_v26 = vpop.xlane.xlu1 %858 }
 0x1a4   : > { %4154 = vst [vmem:[#allocation54_spill] sm:$0xff] %v3334_v8  ;;  %v3338_v55 = vpop.xlane.xlu0 %855  ;;  %v625_v8 = vmul.f32 %v3283_v1, %v490_v43 }
 0x1a5   : > { %4155 = vst [vmem:[#allocation55_spill] sm:$0xff] %v3336_v26  ;;  %v624_v26 = vmul.f32 %v3283_v1, %v489_v10 }
 0x1a6   : > { %4156 = vst [vmem:[#allocation56_spill] sm:$0xff] %v3338_v55  ;;  %v1004_v25 = vsel %vm628_vm0, %v625_v8, 0.0 }
 0x1a7   : > { %v1001_v34 = vsel %vm628_vm0, %v624_v26, 0.0 }
 0x1a8   : > { %996 = vadd.xlane.f32.xlu2 %v995_v45  ;;  %993 = vadd.xlane.f32.xlu1 %v992_v5  ;;  %v998_v45 = vsel %vm628_vm0, %v623_v6, 0.0  ;;  %v492_v5 = vld [vmem:[%s2781_s28 + $0x3f8] sm:$0xff] }
 0x1a9   : > { %990 = vadd.xlane.f32.xlu0 %v989_v44  ;;  %v491_v44 = vld [vmem:[%s2781_s28 + $0x3f0] sm:$0xff]  ;;  %v627_v43 = vmul.f32 %v3283_v1, %v492_v5 }
 0x1aa   : > { %v626_v10 = vmul.f32 %v3283_v1, %v491_v44  ;;  %v2304_v44 = vld [vmem:[%s3154_s16] ss:$0 sm:$0xff] }
 0x1ab   : > { %v3349_v55 = vpop.xlane.xlu2 %870  ;;  %v3351_v56 = vpop.xlane.xlu1 %867  ;;  %v1010_v8 = vsel %vm628_vm0, %v627_v43, 0.0 }
 0x1ac   : > { %4157 = vst [vmem:[#allocation57_spill] sm:$0xff] %v3349_v55  ;;  %v3353_v35 = vpop.xlane.xlu0 %864  ;;  %v1007_v26 = vsel %vm628_vm0, %v626_v10, 0.0 }
 0x1ad   : > { %4158 = vst [vmem:[#allocation58_spill] sm:$0xff] %v3351_v56 }
 0x1b0   : > { %1005 = vadd.xlane.f32.xlu2 %v1004_v25  ;;  %1002 = vadd.xlane.f32.xlu1 %v1001_v34 }
 0x1b1   : > { %999 = vadd.xlane.f32.xlu0 %v998_v45 }
 0x1b3   : > { %v3362_v7 = vpop.xlane.xlu2 %879  ;;  %v3364_v55 = vpop.xlane.xlu1 %876 }
 0x1b4   : > { %4159 = vst [vmem:[#allocation59_spill] sm:$0xff] %v3362_v7  ;;  %v3366_v56 = vpop.xlane.xlu0 %873 }
 0x1b5   : > { %4160 = vst [vmem:[#allocation60_spill] sm:$0xff] %v3364_v55 }
 0x1b8   : > { %1011 = vadd.xlane.f32.xlu1 %v1010_v8  ;;  %v1035_v8 = vadd.s32 24, %v1016_v4 }
 0x1b9   : > { %1008 = vadd.xlane.f32.xlu0 %v1007_v26 }
 0x1bb   : > { %v3370_v6 = vpop.xlane.xlu2 %888  ;;  %v3372_v25 = vpop.xlane.xlu1 %885 }
 0x1bc   : > { %4161 = vst [vmem:[#allocation61_spill] sm:$0xff] %v3370_v6  ;;  %v3374_v34 = vpop.xlane.xlu0 %882 }
 0x1bd   : > { %4162 = vst [vmem:[#allocation62_spill] sm:$0xff] %v3372_v25 }
 0x1c3   : > { %v3376_v45 = vpop.xlane.xlu2 %897  ;;  %v3378_v1 = vpop.xlane.xlu1 %894 }
 0x1c4   : > { %4163 = vst [vmem:[#allocation63_spill] sm:$0xff] %v3376_v45  ;;  %v3380_v5 = vpop.xlane.xlu0 %891 }
 0x1c5   : > { %4164 = vst [vmem:[#allocation64_spill] sm:$0xff] %v3378_v1 }
 0x1c8   : > { %1019 = vperm.xlu2 %2296, %v2304_v44  }
 0x1cb   : > { %v3383_v7 = vpop.xlane.xlu2 %906  ;;  %v3385_v43 = vpop.xlane.xlu1 %903 }
 0x1cc   : > { %4165 = vst [vmem:[#allocation65_spill] sm:$0xff] %v3383_v7  ;;  %v3387_v10 = vpop.xlane.xlu0 %900 }
 0x1cd   : > { %4166 = vst [vmem:[#allocation66_spill] sm:$0xff] %v3385_v43  ;;  %1025 = vperm.xlu0 %2297, %v2304_v44  }
 0x1d0   : > { %2299 = vset.pattern.permute.xlu2 %v1035_v8 }
 0x1d1   : > { %1031 = vperm.xlu1 %2298, %v2304_v44  }
 0x1d3   : > { %v3389_v26 = vpop.xlane.xlu2 %915  ;;  %v3391_v6 = vpop.xlane.xlu1 %912 }
 0x1d4   : > { %4167 = vst [vmem:[#allocation67_spill] sm:$0xff] %v3389_v26  ;;  %v3393_v45 = vpop.xlane.xlu0 %909 }
 0x1d5   : > { %4168 = vst [vmem:[#allocation68_spill] sm:$0xff] %v3391_v6 }
 0x1d6   : > { %4169 = vst [vmem:[#allocation69_spill] sm:$0xff] %v3393_v45 }
 0x1d8   : > { %1037 = vperm.xlu2 %2299, %v2304_v44  }
 0x1db   : > { %v3395_v1 = vpop.xlane.xlu2 %924  ;;  %v3397_v25 = vpop.xlane.xlu1 %921 }
 0x1dc   : > { %4170 = vst [vmem:[#allocation70_spill] sm:$0xff] %v3395_v1  ;;  %v3399_v7 = vpop.xlane.xlu0 %918 }
 0x1dd   : > { %4171 = vst [vmem:[#allocation71_spill] sm:$0xff] %v3397_v25 }
 0x1de   : > { %4172 = vst [vmem:[#allocation72_spill] sm:$0xff] %v3399_v7 }
 0x1e3   : > { %v3401_v43 = vpop.xlane.xlu2 %933  ;;  %v3403_v55 = vpop.xlane.xlu1 %930 }
 0x1e4   : > { %4173 = vst [vmem:[#allocation73_spill] sm:$0xff] %v3401_v43  ;;  %v3405_v4 = vpop.xlane.xlu0 %927 }
 0x1e5   : > { %4174 = vst [vmem:[#allocation74_spill] sm:$0xff] %v3403_v55 }
 0x1e6   : > { %4175 = vst [vmem:[#allocation75_spill] sm:$0xff] %v3405_v4 }
 0x1eb   : > { %v3407_v8 = vpop.xlane.xlu2 %942  ;;  %v3409_v26 = vpop.xlane.xlu1 %939 }
 0x1ec   : > { %4176 = vst [vmem:[#allocation76_spill] sm:$0xff] %v3407_v8  ;;  %v3411_v6 = vpop.xlane.xlu0 %936 }
 0x1ed   : > { %4177 = vst [vmem:[#allocation77_spill] sm:$0xff] %v3409_v26 }
 0x1ee   : > { %4178 = vst [vmem:[#allocation78_spill] sm:$0xff] %v3411_v6 }
 0x1f3   : > { %v3413_v45 = vpop.xlane.xlu2 %951  ;;  %v3415_v44 = vpop.xlane.xlu1 %948 }
 0x1f4   : > { %4179 = vst [vmem:[#allocation79_spill] sm:$0xff] %v3413_v45  ;;  %v3417_v1 = vpop.xlane.xlu0 %945  ;;  %v2543_v45 = vmov 0  }
 0x1f5   : > { %4180 = vst [vmem:[#allocation80_spill] sm:$0xff] %v3415_v44  ;;  %2300 = vset.pattern.permute.xlu2 %v2543_v45  ;;  %2302 = vset.pattern.permute.xlu0 %v2543_v45 }
 0x1f6   : > { %4181 = vst [vmem:[#allocation81_spill] sm:$0xff] %v3417_v1  ;;  %2301 = vset.pattern.permute.xlu1 %v2543_v45 }
 0x1fb   : > { %v3419_v25 = vpop.xlane.xlu2 %960  ;;  %v3421_v7 = vpop.xlane.xlu1 %957 }
 0x1fc   : > { %4182 = vst [vmem:[#allocation82_spill] sm:$0xff] %v3419_v25  ;;  %v3423_v43 = vpop.xlane.xlu0 %954 }
 0x1fd   : > { %4183 = vst [vmem:[#allocation83_spill] sm:$0xff] %v3421_v7 }
 0x1fe   : > { %4184 = vst [vmem:[#allocation84_spill] sm:$0xff] %v3423_v43 }
 0x203   : > { %v3425_v55 = vpop.xlane.xlu2 %969  ;;  %v3427_v4 = vpop.xlane.xlu1 %966 }
 0x204   : > { %4185 = vst [vmem:[#allocation85_spill] sm:$0xff] %v3425_v55  ;;  %v3429_v8 = vpop.xlane.xlu0 %963 }
 0x205   : > { %4186 = vst [vmem:[#allocation86_spill] sm:$0xff] %v3427_v4 }
 0x206   : > { %4187 = vst [vmem:[#allocation87_spill] sm:$0xff] %v3429_v8 }
 0x20b   : > { %v3431_v26 = vpop.xlane.xlu2 %978  ;;  %v3433_v6 = vpop.xlane.xlu1 %975 }
 0x20c   : > { %4188 = vst [vmem:[#allocation88_spill] sm:$0xff] %v3431_v26  ;;  %v3435_v44 = vpop.xlane.xlu0 %972 }
 0x20d   : > { %4189 = vst [vmem:[#allocation89_spill] sm:$0xff] %v3433_v6 }
 0x20e   : > { %4190 = vst [vmem:[#allocation90_spill] sm:$0xff] %v3435_v44 }
 0x213   : > { %v3437_v25 = vpop.xlane.xlu2 %987  ;;  %v3439_v7 = vpop.xlane.xlu1 %984 }
 0x214   : > { %4191 = vst [vmem:[#allocation91_spill] sm:$0xff] %v3437_v25  ;;  %v3441_v43 = vpop.xlane.xlu0 %981 }
 0x215   : > { %4192 = vst [vmem:[#allocation92_spill] sm:$0xff] %v3439_v7 }
 0x216   : > { %4193 = vst [vmem:[#allocation93_spill] sm:$0xff] %v3441_v43 }
 0x21b   : > { %v3443_v55 = vpop.xlane.xlu2 %996  ;;  %v3445_v4 = vpop.xlane.xlu1 %993 }
 0x21c   : > { %4194 = vst [vmem:[#allocation94_spill] sm:$0xff] %v3443_v55  ;;  %v991_v8 = vpop.xlane.xlu0 %990 }
 0x21d   : > { %4195 = vst [vmem:[#allocation95_spill] sm:$0xff] %v3445_v4 }
 0x223   : > { %v3447_v26 = vpop.xlane.xlu2 %1005  ;;  %v1003_v6 = vpop.xlane.xlu1 %1002 }
 0x224   : > { %4196 = vst [vmem:[#allocation96_spill] sm:$0xff] %v3447_v26  ;;  %v3458_v43 = vpop.xlane.xlu0 %999 }
 0x22b   : > { %v3449_v1 = vpop.permute.xlu2 %1019  ;;  %v3462_v4 = vpop.xlane.xlu1 %1011 }
 0x22c   : > { %v3452_v45 = vmul.f32 %v3449_v1, %v1003_v6  ;;  %v1047_v25 = vmul.f32 %v3449_v1, %v2950_v16  ;;  %v1043_v7 = vmul.f32 %v3449_v1, %v2954_v18  ;;  %v3460_v55 = vpop.xlane.xlu0 %1008  ;;  %4197 = vst [vmem:[#allocation97_spill] sm:$0xff] %v3462_v4  ;;  %v3465_v26 = vmul.f32 %v3449_v1, %v991_v8 }
 0x22d   : > { %v1055_v8 = vmul.f32 %v3449_v1, %v3014_v3 }
 0x22e   : > { %1312 = vperm.xlu0 %2302, %v1047_v25   ;;  %1300 = vperm.xlu2 %2300, %v1043_v7  }
 0x233   : > { %v3477_v25 = vpop.permute.xlu2 %1037 }
 0x234   : > { %v1046_v4 = vmul.f32 %v3477_v25, %v2967_v29  ;;  %v1050_v3 = vmul.f32 %v3477_v25, %v2982_v41 }
 0x23f   : > { %v3467_v44 = vpop.permute.xlu0 %1025 }
 0x240   : > { %v1052_v6 = vmul.f32 %v3467_v44, %v2999_v54  ;;  %v1044_v16 = vmul.f32 %v3467_v44, %v2969_v30  ;;  %v1048_v30 = vmul.f32 %v3467_v44, %v2965_v28  ;;  %v1058_v54 = vmul.f32 %v3477_v25, %v3029_v15 }
 0x241   : > { %v1054_v15 = vmul.f32 %v3477_v25, %v2995_v52  ;;  %v1056_v41 = vmul.f32 %v3467_v44, %v3012_v2  ;;  %v1070_v52 = vmul.f32 %v3477_v25, %v3089_v21  ;;  %v1062_v2 = vmul.f32 %v3477_v25, %v3042_v32 }
 0x242   : > { %1327 = vperm.xlu0 %2302, %v1052_v6   ;;  %1303 = vperm.xlu1 %2301, %v1044_v16   ;;  %v1066_v21 = vmul.f32 %v3477_v25, %v3055_v46  ;;  %v1068_v32 = vmul.f32 %v3467_v44, %v3072_v62  ;;  %v1082_v46 = vmul.f32 %v3477_v25, %v3149_v51  ;;  %v4198_v16 = vlaneseq }
 0x243   : > { %v3473_v18 = vpop.permute.xlu1 %1031  ;;  %v1074_v62 = vmul.f32 %v3477_v25, %v3102_v38  ;;  %v1088_v6 = vmul.f32 %v3467_v44, %v3184_v57  ;;  %v1078_v38 = vmul.f32 %v3477_v25, %v3115_v58  ;;  %v1091_v57 = vmul.f32 %v3449_v1, %v3199_v36 }
 0x244   : > { %v1045_v7 = vmul.f32 %v3473_v18, %v2952_v17  ;;  %v1049_v17 = vmul.f32 %v3473_v18, %v2984_v42  ;;  %v1061_v29 = vmul.f32 %v3473_v18, %v3044_v33  ;;  %v1053_v28 = vmul.f32 %v3473_v18, %v2997_v53 }
 0x245   : > { %v1064_v42 = vmul.f32 %v3467_v44, %v3059_v48  ;;  %v1057_v33 = vmul.f32 %v3473_v18, %v3010_v0  ;;  %v1059_v53 = vmul.f32 %v3449_v1, %v3027_v14  ;;  %v1060_v48 = vmul.f32 %v3467_v44, %v3025_v13 }
 0x246   : > { %1306 = vperm.xlu2 %2300, %v1045_v7   ;;  %v1073_v0 = vmul.f32 %v3473_v18, %v3104_v39  ;;  %v1065_v14 = vmul.f32 %v3473_v18, %v3057_v47  ;;  %v1076_v13 = vmul.f32 %v3467_v44, %v3119_v60  ;;  %v1069_v39 = vmul.f32 %v3473_v18, %v3070_v61 }
 0x247   : > { %v1071_v47 = vmul.f32 %v3449_v1, %v3087_v20  ;;  %v1072_v60 = vmul.f32 %v3467_v44, %v3085_v19  ;;  %v1085_v61 = vmul.f32 %v3473_v18, %v3169_v12  ;;  %v1075_v20 = vmul.f32 %v3449_v1, %v3100_v37 }
 0x248   : > { %v1077_v51 = vmul.f32 %v3473_v18, %v3117_v59  ;;  %v3550_v12 = vand.u32 127, %v4198_v16  ;;  %v1080_v37 = vmul.f32 %v3467_v44, %v3132_v23  ;;  %v1081_v58 = vmul.f32 %v3473_v18, %v3130_v22 }
 0x249   : > { %v1084_v36 = vmul.f32 %v3467_v44, %v3145_v49 }
 0x24a   : > { %1336 = vperm.xlu0 %2302, %v1055_v8   ;;  %1309 = vperm.xlu1 %2301, %v1046_v4   ;;  %v1051_v4 = vmul.f32 %v3449_v1, %v2980_v40  ;;  %v1067_v40 = vmul.f32 %v3449_v1, %v3074_v63  ;;  %v1063_v63 = vmul.f32 %v3449_v1, %v3040_v31  ;;  %v3555_v7 = vadd.s32 4294967288, %v3550_v12 }
 0x24b   : > { %v1079_v31 = vmul.f32 %v3449_v1, %v3134_v24  ;;  %v3571_v22 = vadd.s32 4294967280, %v3550_v12 }
 0x24e   : > { %1315 = vperm.xlu2 %2300, %v1048_v30  }
 0x252   : > { %1345 = vperm.xlu0 %2302, %v1058_v54   ;;  %1318 = vperm.xlu1 %2301, %v1049_v17   ;;  %v1083_v17 = vmul.f32 %v3449_v1, %v3147_v50 }
 0x256   : > { %1321 = vperm.xlu2 %2300, %v1050_v3  }
 0x25a   : > { %1354 = vperm.xlu0 %2302, %v1061_v29   ;;  %1324 = vperm.xlu1 %2301, %v1051_v4   ;;  %v1094_v29 = vmul.f32 %v3477_v25, %v3214_v27 }
 0x25e   : > { %1330 = vperm.xlu2 %2300, %v1053_v28  }
 0x262   : > { %1363 = vperm.xlu0 %2302, %v1064_v42   ;;  %1333 = vperm.xlu1 %2301, %v1054_v15   ;;  %v1086_v42 = vmul.f32 %v3477_v25, %v3167_v11  ;;  %v3585_v11 = vadd.s32 4294967272, %v3550_v12 }
 0x266   : > { %1339 = vperm.xlu2 %2300, %v1056_v41  }
 0x26a   : > { %1372 = vperm.xlu0 %2302, %v1067_v40   ;;  %1342 = vperm.xlu1 %2301, %v1057_v33   ;;  %v1097_v40 = vmul.f32 %v3473_v18, %v3229_v9  ;;  %v4199_v33 = vld [vmem:[#allocation27_spill] sm:$0xff] }
 0x26e   : > { %1348 = vperm.xlu2 %2300, %v1059_v53   ;;  %v1087_v53 = vmul.f32 %v3449_v1, %v4199_v33 }
 0x272   : > { %1381 = vperm.xlu0 %2302, %v1070_v52   ;;  %1351 = vperm.xlu1 %2301, %v1060_v48  }
 0x276   : > { %1357 = vperm.xlu2 %2300, %v1062_v2  }
 0x27a   : > { %1390 = vperm.xlu0 %2302, %v1073_v0   ;;  %1360 = vperm.xlu1 %2301, %v1063_v63   ;;  %v4200_v0 = vld [vmem:[#allocation29_spill] sm:$0xff] }
 0x27b   : > { %v1089_v63 = vmul.f32 %v3473_v18, %v4200_v0 }
 0x27e   : > { %1366 = vperm.xlu2 %2300, %v1065_v14  }
 0x282   : > { %1399 = vperm.xlu0 %2302, %v1076_v13   ;;  %1369 = vperm.xlu1 %2301, %v1066_v21   ;;  %v4201_v21 = vld [vmem:[#allocation38_spill] sm:$0xff] }
 0x286   : > { %1375 = vperm.xlu2 %2300, %v1068_v32   ;;  %v1100_v32 = vmul.f32 %v3467_v44, %v4201_v21 }
 0x288   : > { %v1301_v24 = vpop.permute.xlu2 %1300 }
 0x289   : > { %v1685_v50 = vperm.slane %v1301_v24, %v3550_v12 }
 0x28a   : > { %1408 = vperm.xlu0 %2302, %v1079_v31   ;;  %1378 = vperm.xlu1 %2301, %v1069_v39   ;;  %v4202_v31 = vld [vmem:[#allocation28_spill] sm:$0xff] }
 0x28b   : > { %v1090_v39 = vmul.f32 %v3477_v25, %v4202_v31  ;;  %v4212_v31 = vld [vmem:[#allocation37_spill] sm:$0xff] }
 0x28e   : > { %1384 = vperm.xlu2 %2300, %v1071_v47  }
 0x292   : > { %1417 = vperm.xlu0 %2302, %v1082_v46   ;;  %1387 = vperm.xlu1 %2301, %v1072_v60  }
 0x296   : > { %1393 = vperm.xlu2 %2300, %v1074_v62  }
 0x29a   : > { %1426 = vperm.xlu0 %2302, %v1085_v61   ;;  %1396 = vperm.xlu1 %2301, %v1075_v20   ;;  %v4203_v61 = vld [vmem:[#allocation31_spill] sm:$0xff] }
 0x29b   : > { %v1092_v20 = vmul.f32 %v3467_v44, %v4203_v61 }
 0x29e   : > { %1402 = vperm.xlu2 %2300, %v1077_v51  }
 0x2a0   : > { %v1307_v19 = vpop.permute.xlu2 %1306  ;;  %v1313_v59 = vpop.permute.xlu0 %1312 }
 0x2a1   : > { %v1698_v30 = vperm.slane %v1313_v59, %v3550_v12  ;;  %v1691_v27 = vperm.slane %v1307_v19, %v3571_v22 }
 0x2a2   : > { %1435 = vperm.xlu0 %2302, %v1088_v6   ;;  %1405 = vperm.xlu1 %2301, %v1078_v38  }
 0x2a6   : > { %1411 = vperm.xlu2 %2300, %v1080_v37   ;;  %v4204_v37 = vld [vmem:[#allocation41_spill] sm:$0xff] }
 0x2a7   : > { %v1103_v59 = vmul.f32 %v3449_v1, %v4204_v37 }
 0x2a8   : > { %v1316_v8 = vpop.permute.xlu2 %1315 }
 0x2a9   : > { %v1699_v54 = vperm.slane %v1316_v8, %v3555_v7  ;;  %v4205_v8 = vld [vmem:[#allocation30_spill] sm:$0xff] }
 0x2aa   : > { %1444 = vperm.xlu0 %2302, %v1091_v57   ;;  %1414 = vperm.xlu1 %2301, %v1081_v58   ;;  %v1093_v57 = vmul.f32 %v3473_v18, %v4205_v8 }
 0x2ab   : > { %v1700_v23 = vsel %vm1688_vm1, %v1699_v54, %v1698_v30 }
 0x2ae   : > { %1420 = vperm.xlu2 %2300, %v1083_v17   ;;  %v4206_v17 = vld [vmem:[#allocation33_spill] sm:$0xff] }
 0x2b0   : > { %v1322_v3 = vpop.permute.xlu2 %1321 }
 0x2b1   : > { %v1703_v19 = vperm.slane %v1322_v3, %v3585_v11  ;;  %v1095_v3 = vmul.f32 %v3449_v1, %v4206_v17 }
 0x2b2   : > { %1453 = vperm.xlu0 %2302, %v1094_v29   ;;  %1423 = vperm.xlu1 %2301, %v1084_v36  }
 0x2b4   : > { %v1304_v4 = vpop.permute.xlu1 %1303  ;;  %v1328_v28 = vpop.permute.xlu0 %1327 }
 0x2b5   : > { %v1687_v15 = vperm.slane %v1304_v4, %v3555_v7 }
 0x2b6   : > { %1429 = vperm.xlu2 %2300, %v1086_v42  }
 0x2b7   : > { %v1689_v49 = vsel %vm1688_vm1, %v1687_v15, %v1685_v50  ;;  %v4207_v50 = vld [vmem:[#allocation44_spill] sm:$0xff] }
 0x2b8   : > { %v1331_v41 = vpop.permute.xlu2 %1330  ;;  %v1693_v52 = vsel %vm1692_vm2, %v1691_v27, %v1689_v49  ;;  %v1106_v15 = vmul.f32 %v3477_v25, %v4207_v50  ;;  %v4208_v27 = vld [vmem:[#allocation32_spill] sm:$0xff] }
 0x2b9   : > { %v1708_v36 = vperm.slane %v1331_v41, %v3571_v22  ;;  %v1096_v49 = vmul.f32 %v3467_v44, %v4208_v27 }
 0x2ba   : > { %1462 = vperm.xlu0 %2302, %v1097_v40   ;;  %1432 = vperm.xlu1 %2301, %v1087_v53   ;;  %v4209_v53 = vld [vmem:[#allocation35_spill] sm:$0xff] }
 0x2bc   : > { %v1310_v48 = vpop.permute.xlu1 %1309  ;;  %v1337_v2 = vpop.permute.xlu0 %1336 }
 0x2bd   : > { %v1695_v14 = vperm.slane %v1310_v48, %v3585_v11  ;;  %v1712_v47 = vperm.slane %v1337_v2, %v3550_v12 }
 0x2be   : > { %1438 = vperm.xlu2 %2300, %v1089_v63   ;;  %v4210_v63 = vld [vmem:[#allocation47_spill] sm:$0xff] }
 0x2bf   : > { %v1697_v9 = vsel %vm1696_vm3, %v1695_v14, %v1693_v52  ;;  %v1098_v52 = vmul.f32 %v3477_v25, %v4209_v53  ;;  %v1109_v14 = vmul.f32 %v3473_v18, %v4210_v63  ;;  %v4218_v53 = vld [vmem:[#allocation43_spill] sm:$0xff] }
 0x2c0   : > { %v1340_v13 = vpop.permute.xlu2 %1339 }
 0x2c1   : > { %v1713_v46 = vperm.slane %v1340_v13, %v3555_v7 }
 0x2c2   : > { %1471 = vperm.xlu0 %2302, %v1100_v32   ;;  %1441 = vperm.xlu1 %2301, %v1090_v39   ;;  %v1101_v39 = vmul.f32 %v3473_v18, %v4212_v31 }
 0x2c3   : > { %v1714_v60 = vsel %vm1688_vm1, %v1713_v46, %v1712_v47 }
 0x2c4   : > { %v1319_v62 = vpop.permute.xlu1 %1318  ;;  %v1346_v24 = vpop.permute.xlu0 %1345 }
 0x2c5   : > { %v1701_v51 = vperm.slane %v1319_v62, %v3571_v22  ;;  %v1717_v46 = vperm.slane %v1346_v24, %v3585_v11 }
 0x2c6   : > { %1447 = vperm.xlu2 %2300, %v1092_v20  }
 0x2c7   : > { %v1702_v6 = vsel %vm1692_vm2, %v1701_v51, %v1700_v23  ;;  %v1706_v23 = vperm.slane %v1328_v28, %v3555_v7  ;;  %v4213_v51 = vld [vmem:[#allocation50_spill] sm:$0xff] }
 0x2c8   : > { %v1704_v38 = vsel %vm1696_vm3, %v1703_v19, %v1702_v6  ;;  %v1349_v16 = vpop.permute.xlu2 %1348  ;;  %v1112_v19 = vmul.f32 %v3467_v44, %v4213_v51  ;;  %v4214_v6 = vld [vmem:[#allocation36_spill] sm:$0xff]  ;;  %v4222_v51 = vld [vmem:[#allocation45_spill] sm:$0xff] }
 0x2c9   : > { %v1916_v58 = vsel %vm1915_vm4, %v1704_v38, %v1697_v9  ;;  %v4211_v9 = vld [vmem:[#allocation34_spill] sm:$0xff]  ;;  %v1102_v38 = vmul.f32 %v3477_v25, %v4214_v6  ;;  %v1719_v17 = vperm.slane %v1349_v16, %v3550_v12 }
 0x2ca   : > { %1480 = vperm.xlu0 %2302, %v1103_v59   ;;  %1450 = vperm.xlu1 %2301, %v1093_v57   ;;  %v1099_v13 = vmul.f32 %v3449_v1, %v4211_v9  ;;  %v4219_v9 = vld [vmem:[#allocation56_spill] sm:$0xff] }
 0x2cc   : > { %v1325_v30 = vpop.permute.xlu1 %1324  ;;  %v1355_v54 = vpop.permute.xlu0 %1354 }
 0x2cd   : > { %v1705_v29 = vperm.slane %v1325_v30, %v3550_v12 }
 0x2ce   : > { %1456 = vperm.xlu2 %2300, %v1095_v3  }
 0x2cf   : > { %v1707_v4 = vsel %vm1688_vm1, %v1706_v23, %v1705_v29  ;;  %v1722_v23 = vperm.slane %v1355_v54, %v3571_v22 }
 0x2d0   : > { %v1358_v42 = vpop.permute.xlu2 %1357  ;;  %v1709_v40 = vsel %vm1692_vm2, %v1708_v36, %v1707_v4 }
 0x2d1   : > { %v1724_v29 = vperm.slane %v1358_v42, %v3585_v11 }
 0x2d2   : > { %1489 = vperm.xlu0 %2302, %v1106_v15   ;;  %1459 = vperm.xlu1 %2301, %v1096_v49   ;;  %v4216_v15 = vld [vmem:[#allocation53_spill] sm:$0xff]  ;;  %v4217_v49 = vld [vmem:[#allocation39_spill] sm:$0xff] }
 0x2d3   : > { %v1115_v27 = vmul.f32 %v3449_v1, %v4216_v15 }
 0x2d4   : > { %v1334_v33 = vpop.permute.xlu1 %1333  ;;  %v1364_v28 = vpop.permute.xlu0 %1363 }
 0x2d5   : > { %v1710_v41 = vperm.slane %v1334_v33, %v3585_v11 }
 0x2d6   : > { %1465 = vperm.xlu2 %2300, %v1098_v52   ;;  %v1107_v52 = vmul.f32 %v3449_v1, %v4218_v53 }
 0x2d7   : > { %v1711_v48 = vsel %vm1696_vm3, %v1710_v41, %v1709_v40  ;;  %v1105_v40 = vmul.f32 %v3473_v18, %v4217_v49  ;;  %v1727_v41 = vperm.slane %v1364_v28, %v3555_v7  ;;  %v4225_v49 = vld [vmem:[#allocation52_spill] sm:$0xff] }
 0x2d8   : > { %v1918_v2 = vsel %vm1917_vm5, %v1711_v48, %v1916_v58  ;;  %v1367_v0 = vpop.permute.xlu2 %1366  ;;  %v4215_v58 = vld [vmem:[#allocation40_spill] sm:$0xff] }
 0x2d9   : > { %v1104_v30 = vmul.f32 %v3467_v44, %v4215_v58 }
 0x2da   : > { %1498 = vperm.xlu0 %2302, %v1109_v14   ;;  %1468 = vperm.xlu1 %2301, %v1099_v13   ;;  %v1118_v13 = vmul.f32 %v3477_v25, %v4219_v9 }
 0x2dc   : > { %v1343_v21 = vpop.permute.xlu1 %1342  ;;  %v1373_v32 = vpop.permute.xlu0 %1372 }
 0x2dd   : > { %v1715_v47 = vperm.slane %v1343_v21, %v3571_v22  ;;  %v1733_v59 = vperm.slane %v1373_v32, %v3550_v12  ;;  %v4220_v21 = vld [vmem:[#allocation42_spill] sm:$0xff] }
 0x2de   : > { %1474 = vperm.xlu2 %2300, %v1101_v39   ;;  %v1108_v32 = vmul.f32 %v3467_v44, %v4220_v21 }
 0x2df   : > { %v1716_v62 = vsel %vm1692_vm2, %v1715_v47, %v1714_v60  ;;  %v4221_v47 = vld [vmem:[#allocation46_spill] sm:$0xff] }
 0x2e0   : > { %v1718_v61 = vsel %vm1696_vm3, %v1717_v46, %v1716_v62  ;;  %v1376_v20 = vpop.permute.xlu2 %1375  ;;  %v1110_v46 = vmul.f32 %v3477_v25, %v4221_v47 }
 0x2e1   : > { %v1920_v37 = vsel %vm1919_vm6, %v1718_v61, %v1918_v2  ;;  %v1734_v8 = vperm.slane %v1376_v20, %v3555_v7  ;;  %v1729_v2 = vperm.slane %v1367_v0, %v3571_v22  ;;  %v1121_v20 = vmul.f32 %v3473_v18, %v3353_v35 }
 0x2e2   : > { %1507 = vperm.xlu0 %2302, %v1112_v19   ;;  %1477 = vperm.xlu1 %2301, %v1102_v38   ;;  %v1111_v19 = vmul.f32 %v3449_v1, %v4222_v51 }
 0x2e3   : > { %v1735_v24 = vsel %vm1688_vm1, %v1734_v8, %v1733_v59  ;;  %v4223_v59 = vld [vmem:[#allocation49_spill] sm:$0xff] }
 0x2e4   : > { %v1352_v60 = vpop.permute.xlu1 %1351  ;;  %v1382_v57 = vpop.permute.xlu0 %1381  ;;  %v1113_v8 = vmul.f32 %v3473_v18, %v4223_v59  ;;  %v4230_v59 = vld [vmem:[#allocation57_spill] sm:$0xff] }
 0x2e5   : > { %v1720_v3 = vperm.slane %v1352_v60, %v3555_v7  ;;  %v1738_v58 = vperm.slane %v1382_v57, %v3585_v11 }
 0x2e6   : > { %1483 = vperm.xlu2 %2300, %v1104_v30  }
 0x2e7   : > { %v1721_v36 = vsel %vm1688_vm1, %v1720_v3, %v1719_v17  ;;  %v1124_v17 = vmul.f32 %v3467_v44, %v3366_v56  ;;  %v4224_v3 = vld [vmem:[#allocation48_spill] sm:$0xff]  ;;  %v1116_v56 = vmul.f32 %v3467_v44, %v4225_v49 }
 0x2e8   : > { %v1723_v4 = vsel %vm1692_vm2, %v1722_v23, %v1721_v36  ;;  %v1385_v50 = vpop.permute.xlu2 %1384  ;;  %v1114_v23 = vmul.f32 %v3477_v25, %v4224_v3 }
 0x2e9   : > { %v1725_v16 = vsel %vm1696_vm3, %v1724_v29, %v1723_v4 }
 0x2ea   : > { %1516 = vperm.xlu0 %2302, %v1115_v27   ;;  %1486 = vperm.xlu1 %2301, %v1105_v40   ;;  %v1922_v54 = vsel %vm1921_vm7, %v1725_v16, %v1920_v37  ;;  %v1740_v40 = vperm.slane %v1385_v50, %v3550_v12 }
 0x2ec   : > { %v1361_v33 = vpop.permute.xlu1 %1360  ;;  %v1391_v42 = vpop.permute.xlu0 %1390 }
 0x2ed   : > { %v1726_v48 = vperm.slane %v1361_v33, %v3550_v12 }
 0x2ee   : > { %1492 = vperm.xlu2 %2300, %v1107_v52  }
 0x2ef   : > { %v1728_v63 = vsel %vm1688_vm1, %v1727_v41, %v1726_v48  ;;  %v1127_v41 = vmul.f32 %v3449_v1, %v3374_v34  ;;  %v4226_v48 = vld [vmem:[#allocation51_spill] sm:$0xff] }
 0x2f0   : > { %v1394_v14 = vpop.permute.xlu2 %1393  ;;  %v1730_v31 = vsel %vm1692_vm2, %v1729_v2, %v1728_v63  ;;  %v1117_v2 = vmul.f32 %v3473_v18, %v4226_v48 }
 0x2f1   : > { %v1745_v33 = vperm.slane %v1394_v14, %v3585_v11 }
 0x2f2   : > { %1525 = vperm.xlu0 %2302, %v1118_v13   ;;  %1495 = vperm.xlu1 %2301, %v1108_v32   ;;  %v4227_v13 = vld [vmem:[#allocation55_spill] sm:$0xff] }
 0x2f3   : > { %v1119_v21 = vmul.f32 %v3449_v1, %v4227_v13  ;;  %v4235_v13 = vld [vmem:[#allocation72_spill] sm:$0xff] }
 0x2f4   : > { %v1370_v39 = vpop.permute.xlu1 %1369  ;;  %v1400_v28 = vpop.permute.xlu0 %1399 }
 0x2f5   : > { %v1731_v0 = vperm.slane %v1370_v39, %v3585_v11  ;;  %v1748_v32 = vperm.slane %v1400_v28, %v3555_v7 }
 0x2f6   : > { %1501 = vperm.xlu2 %2300, %v1110_v46   ;;  %v1130_v46 = vmul.f32 %v3477_v25, %v3380_v5  ;;  %v1133_v5 = vmul.f32 %v3473_v18, %v3387_v10 }
 0x2f7   : > { %v1732_v62 = vsel %vm1696_vm3, %v1731_v0, %v1730_v31  ;;  %v4228_v0 = vld [vmem:[#allocation54_spill] sm:$0xff] }
 0x2f8   : > { %v1403_v61 = vpop.permute.xlu2 %1402  ;;  %v1924_v6 = vsel %vm1923_vm8, %v1732_v62, %v1922_v54  ;;  %v1743_v54 = vperm.slane %v1391_v42, %v3571_v22  ;;  %v1120_v62 = vmul.f32 %v3467_v44, %v4228_v0 }
 0x2f9   : > { %v1750_v31 = vperm.slane %v1403_v61, %v3571_v22 }
 0x2fa   : > { %1534 = vperm.xlu0 %2302, %v1121_v20   ;;  %1504 = vperm.xlu1 %2301, %v1111_v19   ;;  %v4229_v19 = vld [vmem:[#allocation58_spill] sm:$0xff] }
 0x2fc   : > { %v1379_v38 = vpop.permute.xlu1 %1378  ;;  %v1409_v37 = vpop.permute.xlu0 %1408 }
 0x2fd   : > { %v1736_v60 = vperm.slane %v1379_v38, %v3571_v22  ;;  %v1754_v36 = vperm.slane %v1409_v37, %v3550_v12 }
 0x2fe   : > { %1510 = vperm.xlu2 %2300, %v1113_v8   ;;  %v1123_v8 = vmul.f32 %v3449_v1, %v4230_v59 }
 0x2ff   : > { %v1737_v35 = vsel %vm1692_vm2, %v1736_v60, %v1735_v24 }
 0x300   : > { %v1412_v30 = vpop.permute.xlu2 %1411  ;;  %v1739_v29 = vsel %vm1696_vm3, %v1738_v58, %v1737_v35  ;;  %v4231_v35 = vld [vmem:[#allocation60_spill] sm:$0xff] }
 0x301   : > { %v1755_v4 = vperm.slane %v1412_v30, %v3555_v7  ;;  %v1926_v15 = vsel %vm1925_vm9, %v1739_v29, %v1924_v6  ;;  %v1122_v6 = vmul.f32 %v3477_v25, %v4229_v19  ;;  %v1125_v30 = vmul.f32 %v3473_v18, %v4231_v35 }
 0x302   : > { %1543 = vperm.xlu0 %2302, %v1124_v17   ;;  %1513 = vperm.xlu1 %2301, %v1114_v23  }
 0x303   : > { %v1756_v57 = vsel %vm1688_vm1, %v1755_v4, %v1754_v36  ;;  %v4232_v36 = vld [vmem:[#allocation69_spill] sm:$0xff] }
 0x304   : > { %v1388_v24 = vpop.permute.xlu1 %1387  ;;  %v1418_v27 = vpop.permute.xlu0 %1417  ;;  %v1136_v4 = vmul.f32 %v3467_v44, %v4232_v36 }
 0x305   : > { %v1741_v16 = vperm.slane %v1388_v24, %v3555_v7  ;;  %v1759_v3 = vperm.slane %v1418_v27, %v3585_v11 }
 0x306   : > { %1519 = vperm.xlu2 %2300, %v1116_v56  }
 0x307   : > { %v1742_v53 = vsel %vm1688_vm1, %v1741_v16, %v1740_v40 }
 0x308   : > { %v1421_v52 = vpop.permute.xlu2 %1420  ;;  %v1744_v63 = vsel %vm1692_vm2, %v1743_v54, %v1742_v53  ;;  %v4234_v54 = vld [vmem:[#allocation62_spill] sm:$0xff] }
 0x309   : > { %v1746_v50 = vsel %vm1696_vm3, %v1745_v33, %v1744_v63  ;;  %v1128_v33 = vmul.f32 %v3467_v44, %v4234_v54  ;;  %v1761_v53 = vperm.slane %v1421_v52, %v3550_v12 }
 0x30a   : > { %1552 = vperm.xlu0 %2302, %v1127_v41   ;;  %1522 = vperm.xlu1 %2301, %v1117_v2   ;;  %v3705_v42 = vsel %vm1927_vm10, %v1746_v50, %v1926_v15  ;;  %v4233_v15 = vld [vmem:[#allocation59_spill] sm:$0xff] }
 0x30b   : > { %v1126_v24 = vmul.f32 %v3477_v25, %v4233_v15  ;;  %v4243_v15 = vld [vmem:[#allocation68_spill] sm:$0xff] }
 0x30c   : > { %v1397_v14 = vpop.permute.xlu1 %1396  ;;  %v1427_v9 = vpop.permute.xlu0 %1426 }
 0x30d   : > { %v1747_v34 = vperm.slane %v1397_v14, %v3550_v12  ;;  %v1764_v48 = vperm.slane %v1427_v9, %v3571_v22 }
 0x30e   : > { %1528 = vperm.xlu2 %2300, %v1119_v21   ;;  %v1139_v21 = vmul.f32 %v3449_v1, %v4235_v13 }
 0x30f   : > { %v1749_v39 = vsel %vm1688_vm1, %v1748_v32, %v1747_v34  ;;  %v4236_v32 = vld [vmem:[#allocation61_spill] sm:$0xff] }
 0x310   : > { %v1430_v47 = vpop.permute.xlu2 %1429  ;;  %v1751_v20 = vsel %vm1692_vm2, %v1750_v31, %v1749_v39  ;;  %v1129_v34 = vmul.f32 %v3473_v18, %v4236_v32 }
 0x311   : > { %v1766_v2 = vperm.slane %v1430_v47, %v3585_v11  ;;  %v4237_v47 = vld [vmem:[#allocation64_spill] sm:$0xff] }
 0x312   : > { %1561 = vperm.xlu0 %2302, %v1130_v46   ;;  %1531 = vperm.xlu1 %2301, %v1120_v62   ;;  %v1131_v46 = vmul.f32 %v3449_v1, %v4237_v47 }
 0x314   : > { %v1406_v51 = vpop.permute.xlu1 %1405  ;;  %v1436_v28 = vpop.permute.xlu0 %1435 }
 0x315   : > { %v1752_v61 = vperm.slane %v1406_v51, %v3585_v11  ;;  %v1769_v0 = vperm.slane %v1436_v28, %v3555_v7 }
 0x316   : > { %1537 = vperm.xlu2 %2300, %v1122_v6   ;;  %v4238_v6 = vld [vmem:[#allocation75_spill] sm:$0xff] }
 0x317   : > { %v1753_v38 = vsel %vm1696_vm3, %v1752_v61, %v1751_v20  ;;  %v1142_v61 = vmul.f32 %v3477_v25, %v4238_v6 }
 0x318   : > { %v1439_v37 = vpop.permute.xlu2 %1438 }
 0x319   : > { %v1771_v20 = vperm.slane %v1439_v37, %v3571_v22 }
 0x31a   : > { %1570 = vperm.xlu0 %2302, %v1133_v5   ;;  %1540 = vperm.xlu1 %2301, %v1123_v8  }
 0x31c   : > { %v1415_v60 = vpop.permute.xlu1 %1414  ;;  %v1445_v58 = vpop.permute.xlu0 %1444 }
 0x31d   : > { %v1757_v17 = vperm.slane %v1415_v60, %v3571_v22  ;;  %v1775_v56 = vperm.slane %v1445_v58, %v3550_v12  ;;  %v4240_v60 = vld [vmem:[#allocation66_spill] sm:$0xff] }
 0x31e   : > { %1546 = vperm.xlu2 %2300, %v1125_v30   ;;  %v1134_v58 = vmul.f32 %v3477_v25, %v4240_v60 }
 0x31f   : > { %v1758_v23 = vsel %vm1692_vm2, %v1757_v17, %v1756_v57 }
 0x320   : > { %v1760_v29 = vsel %vm1696_vm3, %v1759_v3, %v1758_v23  ;;  %v1448_v10 = vpop.permute.xlu2 %1447  ;;  %v4241_v3 = vld [vmem:[#allocation78_spill] sm:$0xff] }
 0x321   : > { %v1929_v49 = vsel %vm1915_vm4, %v1760_v29, %v1753_v38  ;;  %v1776_v40 = vperm.slane %v1448_v10, %v3555_v7  ;;  %v4239_v38 = vld [vmem:[#allocation63_spill] sm:$0xff]  ;;  %v1145_v23 = vmul.f32 %v3473_v18, %v4241_v3  ;;  %v4242_v29 = vld [vmem:[#allocation65_spill] sm:$0xff] }
 0x322   : > { %1579 = vperm.xlu0 %2302, %v1136_v4   ;;  %1549 = vperm.xlu1 %2301, %v1126_v24   ;;  %v1132_v5 = vmul.f32 %v3467_v44, %v4239_v38  ;;  %v1135_v10 = vmul.f32 %v3449_v1, %v4242_v29  ;;  %v1137_v24 = vmul.f32 %v3473_v18, %v4243_v15  ;;  %v4251_v3 = vld [vmem:[#allocation73_spill] sm:$0xff] }
 0x323   : > { %v1777_v27 = vsel %vm1688_vm1, %v1776_v40, %v1775_v56 }
 0x324   : > { %v1424_v57 = vpop.permute.xlu1 %1423  ;;  %v1454_v16 = vpop.permute.xlu0 %1453 }
 0x325   : > { %v1762_v41 = vperm.slane %v1424_v57, %v3555_v7  ;;  %v1780_v56 = vperm.slane %v1454_v16, %v3585_v11 }
 0x326   : > { %1555 = vperm.xlu2 %2300, %v1128_v33   ;;  %v4244_v33 = vld [vmem:[#allocation81_spill] sm:$0xff] }
 0x327   : > { %v1763_v63 = vsel %vm1688_vm1, %v1762_v41, %v1761_v53  ;;  %v1148_v53 = vmul.f32 %v3467_v44, %v4244_v33  ;;  %v4245_v41 = vld [vmem:[#allocation67_spill] sm:$0xff] }
 0x328   : > { %v1765_v50 = vsel %vm1692_vm2, %v1764_v48, %v1763_v63  ;;  %v1457_v14 = vpop.permute.xlu2 %1456  ;;  %v1138_v48 = vmul.f32 %v3477_v25, %v4245_v41  ;;  %v4255_v41 = vld [vmem:[#allocation80_spill] sm:$0xff] }
 0x329   : > { %v1767_v52 = vsel %vm1696_vm3, %v1766_v2, %v1765_v50 }
 0x32a   : > { %1588 = vperm.xlu0 %2302, %v1139_v21   ;;  %1558 = vperm.xlu1 %2301, %v1129_v34   ;;  %v1930_v9 = vsel %vm1917_vm5, %v1767_v52, %v1929_v49  ;;  %v4246_v21 = vld [vmem:[#allocation71_spill] sm:$0xff]  ;;  %v1782_v34 = vperm.slane %v1457_v14, %v3550_v12 }
 0x32b   : > { %v1140_v32 = vmul.f32 %v3467_v44, %v4246_v21  ;;  %v4256_v21 = vld [vmem:[#allocation93_spill] sm:$0xff] }
 0x32c   : > { %v1433_v31 = vpop.permute.xlu1 %1432  ;;  %v1463_v39 = vpop.permute.xlu0 %1462 }
 0x32d   : > { %v1768_v62 = vperm.slane %v1433_v31, %v3550_v12 }
 0x32e   : > { %1564 = vperm.xlu2 %2300, %v1131_v46  }
 0x32f   : > { %v1770_v51 = vsel %vm1688_vm1, %v1769_v0, %v1768_v62  ;;  %v4247_v62 = vld [vmem:[#allocation84_spill] sm:$0xff] }
 0x330   : > { %v1466_v19 = vpop.permute.xlu2 %1465  ;;  %v1772_v59 = vsel %vm1692_vm2, %v1771_v20, %v1770_v51  ;;  %v1151_v20 = vmul.f32 %v3449_v1, %v4247_v62  ;;  %v4248_v51 = vld [vmem:[#allocation70_spill] sm:$0xff] }
 0x331   : > { %v1787_v31 = vperm.slane %v1466_v19, %v3585_v11  ;;  %v1141_v6 = vmul.f32 %v3473_v18, %v4248_v51  ;;  %v4249_v19 = vld [vmem:[#allocation74_spill] sm:$0xff] }
 0x332   : > { %1597 = vperm.xlu0 %2302, %v1142_v61   ;;  %1567 = vperm.xlu1 %2301, %v1132_v5   ;;  %v1143_v5 = vmul.f32 %v3449_v1, %v4249_v19  ;;  %v4259_v19 = vld [vmem:[#allocation95_spill] sm:$0xff] }
 0x334   : > { %v1442_v8 = vpop.permute.xlu1 %1441  ;;  %v1472_v28 = vpop.permute.xlu0 %1471 }
 0x335   : > { %v1773_v37 = vperm.slane %v1442_v8, %v3585_v11 }
 0x336   : > { %1573 = vperm.xlu2 %2300, %v1134_v58  }
 0x337   : > { %v1774_v35 = vsel %vm1696_vm3, %v1773_v37, %v1772_v59  ;;  %v1790_v59 = vperm.slane %v1472_v28, %v3555_v7 }
 0x338   : > { %v1931_v30 = vsel %vm1919_vm6, %v1774_v35, %v1930_v9  ;;  %v1475_v17 = vpop.permute.xlu2 %1474  ;;  %v1785_v9 = vperm.slane %v1463_v39, %v3571_v22  ;;  %v4250_v35 = vld [vmem:[#allocation87_spill] sm:$0xff] }
 0x339   : > { %v1792_v60 = vperm.slane %v1475_v17, %v3571_v22 }
 0x33a   : > { %1606 = vperm.xlu0 %2302, %v1145_v23   ;;  %1576 = vperm.xlu1 %2301, %v1135_v10   ;;  %v1144_v23 = vmul.f32 %v3467_v44, %v4251_v3 }
 0x33c   : > { %v1451_v36 = vpop.permute.xlu1 %1450  ;;  %v1481_v4 = vpop.permute.xlu0 %1480 }
 0x33d   : > { %v1778_v49 = vperm.slane %v1451_v36, %v3571_v22  ;;  %v1796_v2 = vperm.slane %v1481_v4, %v3550_v12  ;;  %v4252_v36 = vld [vmem:[#allocation77_spill] sm:$0xff] }
 0x33e   : > { %1582 = vperm.xlu2 %2300, %v1137_v24   ;;  %v1146_v4 = vmul.f32 %v3477_v25, %v4252_v36 }
 0x33f   : > { %v1779_v40 = vsel %vm1692_vm2, %v1778_v49, %v1777_v27  ;;  %v4253_v49 = vld [vmem:[#allocation90_spill] sm:$0xff] }
 0x340   : > { %v1781_v57 = vsel %vm1696_vm3, %v1780_v56, %v1779_v40  ;;  %v1484_v54 = vpop.permute.xlu2 %1483  ;;  %v1157_v56 = vmul.f32 %v3473_v18, %v4253_v49  ;;  %v4254_v40 = vld [vmem:[#allocation76_spill] sm:$0xff] }
 0x341   : > { %v1797_v63 = vperm.slane %v1484_v54, %v3555_v7  ;;  %v1932_v50 = vsel %vm1921_vm7, %v1781_v57, %v1931_v30  ;;  %v1154_v30 = vmul.f32 %v3477_v25, %v4250_v35  ;;  %v1147_v57 = vmul.f32 %v3449_v1, %v4254_v40 }
 0x342   : > { %1615 = vperm.xlu0 %2302, %v1148_v53   ;;  %1585 = vperm.xlu1 %2301, %v1138_v48   ;;  %v1149_v48 = vmul.f32 %v3473_v18, %v4255_v41 }
 0x343   : > { %v1798_v16 = vsel %vm1688_vm1, %v1797_v63, %v1796_v2 }
 0x344   : > { %v1460_v27 = vpop.permute.xlu1 %1459  ;;  %v1490_v13 = vpop.permute.xlu0 %1489 }
 0x345   : > { %v1783_v52 = vperm.slane %v1460_v27, %v3555_v7  ;;  %v1801_v63 = vperm.slane %v1490_v13, %v3585_v11 }
 0x346   : > { %1591 = vperm.xlu2 %2300, %v1140_v32   ;;  %v1160_v32 = vmul.f32 %v3467_v44, %v4256_v21 }
 0x347   : > { %v1784_v47 = vsel %vm1688_vm1, %v1783_v52, %v1782_v34  ;;  %v4257_v34 = vld [vmem:[#allocation79_spill] sm:$0xff] }
 0x348   : > { %v1786_v46 = vsel %vm1692_vm2, %v1785_v9, %v1784_v47  ;;  %v1493_v0 = vpop.permute.xlu2 %1492  ;;  %v1150_v52 = vmul.f32 %v3477_v25, %v4257_v34  ;;  %v4266_v34 = vld [vmem:[#allocation91_spill] sm:$0xff] }
 0x349   : > { %v1788_v14 = vsel %vm1696_vm3, %v1787_v31, %v1786_v46  ;;  %v4258_v46 = vld [vmem:[#allocation83_spill] sm:$0xff]  ;;  %v1803_v62 = vperm.slane %v1493_v0, %v3550_v12 }
 0x34a   : > { %1624 = vperm.xlu0 %2302, %v1151_v20   ;;  %1594 = vperm.xlu1 %2301, %v1141_v6   ;;  %v1933_v39 = vsel %vm1923_vm8, %v1788_v14, %v1932_v50 }
 0x34c   : > { %v1469_v61 = vpop.permute.xlu1 %1468  ;;  %v1499_v38 = vpop.permute.xlu0 %1498 }
 0x34d   : > { %v1789_v8 = vperm.slane %v1469_v61, %v3550_v12  ;;  %v1806_v51 = vperm.slane %v1499_v38, %v3571_v22 }
 0x34e   : > { %1600 = vperm.xlu2 %2300, %v1143_v5   ;;  %v1164_v5 = vmul.f32 %v3467_v44, %v4259_v19 }
 0x34f   : > { %v1791_v58 = vsel %vm1688_vm1, %v1790_v59, %v1789_v8  ;;  %v4260_v59 = vld [vmem:[#allocation82_spill] sm:$0xff] }
 0x350   : > { %v1502_v37 = vpop.permute.xlu2 %1501  ;;  %v1793_v29 = vsel %vm1692_vm2, %v1792_v60, %v1791_v58  ;;  %v1153_v8 = vmul.f32 %v3473_v18, %v4260_v59  ;;  %v4261_v58 = vld [vmem:[#allocation86_spill] sm:$0xff] }
 0x351   : > { %v1808_v6 = vperm.slane %v1502_v37, %v3585_v11  ;;  %v1155_v37 = vmul.f32 %v3449_v1, %v4261_v58 }
 0x352   : > { %1633 = vperm.xlu0 %2302, %v1154_v30   ;;  %1603 = vperm.xlu1 %2301, %v1144_v23  }
 0x354   : > { %v1478_v10 = vpop.permute.xlu1 %1477  ;;  %v1508_v28 = vpop.permute.xlu0 %1507 }
 0x355   : > { %v1794_v17 = vperm.slane %v1478_v10, %v3585_v11  ;;  %v1811_v35 = vperm.slane %v1508_v28, %v3555_v7  ;;  %v4262_v10 = vld [vmem:[#allocation85_spill] sm:$0xff] }
 0x356   : > { %1609 = vperm.xlu2 %2300, %v1146_v4   ;;  %v1156_v36 = vmul.f32 %v3467_v44, %v4262_v10  ;;  %v4263_v28 = vld [vmem:[#allocation89_spill] sm:$0xff] }
 0x357   : > { %v1795_v15 = vsel %vm1696_vm3, %v1794_v17, %v1793_v29  ;;  %v1158_v49 = vmul.f32 %v3477_v25, %v4263_v28 }
 0x358   : > { %v1511_v24 = vpop.permute.xlu2 %1510  ;;  %v1934_v54 = vsel %vm1925_vm9, %v1795_v15, %v1933_v39 }
 0x359   : > { %v1813_v3 = vperm.slane %v1511_v24, %v3571_v22 }
 0x35a   : > { %1642 = vperm.xlu0 %2302, %v1157_v56   ;;  %1612 = vperm.xlu1 %2301, %v1147_v57  }
 0x35c   : > { %v1487_v33 = vpop.permute.xlu1 %1486  ;;  %v3822_v53 = vpop.permute.xlu0 %1516 }
 0x35d   : > { %v1799_v2 = vperm.slane %v1487_v33, %v3571_v22 }
 0x35e   : > { %1618 = vperm.xlu2 %2300, %v1149_v48  }
 0x35f   : > { %v1800_v50 = vsel %vm1692_vm2, %v1799_v2, %v1798_v16  ;;  %v1152_v16 = vmul.f32 %v3467_v44, %v4258_v46  ;;  %v4265_v2 = vld [vmem:[#allocation92_spill] sm:$0xff] }
 0x360   : > { %v3829_v27 = vpop.permute.xlu2 %1519  ;;  %v1802_v9 = vsel %vm1696_vm3, %v1801_v63, %v1800_v50  ;;  %v1161_v63 = vmul.f32 %v3473_v18, %v4265_v2 }
 0x361   : > { %v3837_v31 = vsel %vm1927_vm10, %v1802_v9, %v1934_v54  ;;  %v4264_v54 = vld [vmem:[#allocation88_spill] sm:$0xff] }
 0x362   : > { %1651 = vperm.xlu0 %2302, %v1160_v32   ;;  %1621 = vperm.xlu1 %2301, %v1150_v52   ;;  %v1159_v33 = vmul.f32 %v3449_v1, %v4264_v54  ;;  %v4267_v52 = vld [vmem:[#allocation94_spill] sm:$0xff] }
 0x363   : > { %v1165_v9 = vmul.f32 %v3473_v18, %v4267_v52 }
 0x364   : > { %v1496_v47 = vpop.permute.xlu1 %1495  ;;  %v3839_v13 = vpop.permute.xlu0 %1525 }
 0x365   : > { %v1804_v20 = vperm.slane %v1496_v47, %v3555_v7 }
 0x366   : > { %1627 = vperm.xlu2 %2300, %v1152_v16   ;;  %v4268_v16 = vld [vmem:[#allocation96_spill] sm:$0xff] }
 0x367   : > { %v1805_v14 = vsel %vm1688_vm1, %v1804_v20, %v1803_v62  ;;  %v1168_v62 = vmul.f32 %v3467_v44, %v4268_v16 }
 0x368   : > { %v1807_v39 = vsel %vm1692_vm2, %v1806_v51, %v1805_v14  ;;  %v3849_v61 = vpop.permute.xlu2 %1528  ;;  %v4269_v51 = vld [vmem:[#allocation97_spill] sm:$0xff] }
 0x369   : > { %v1809_v0 = vsel %vm1696_vm3, %v1808_v6, %v1807_v39  ;;  %v1170_v6 = vmul.f32 %v3477_v25, %v4269_v51 }
 0x36a   : > { %1663 = vperm.xlu0 %2302, %v1164_v5   ;;  %1630 = vperm.xlu1 %2301, %v1153_v8  }
 0x36c   : > { %v1505_v38 = vpop.permute.xlu1 %1504  ;;  %v3856_v60 = vpop.permute.xlu0 %1534 }
 0x36d   : > { %v1810_v30 = vperm.slane %v1505_v38, %v3550_v12 }
 0x36e   : > { %1636 = vperm.xlu2 %2300, %v1155_v37   ;;  %v1818_v37 = vperm.slane %v3829_v27, %v3555_v7  ;;  %v1822_v27 = vperm.slane %v3839_v13, %v3585_v11 }
 0x36f   : > { %v1812_v23 = vsel %vm1688_vm1, %v1811_v35, %v1810_v30  ;;  %v1817_v30 = vperm.slane %v3822_v53, %v3550_v12  ;;  %v1827_v53 = vperm.slane %v3856_v60, %v3571_v22 }
 0x370   : > { %v3864_v29 = vpop.permute.xlu2 %1537  ;;  %v1814_v4 = vsel %vm1692_vm2, %v1813_v3, %v1812_v23  ;;  %v1824_v3 = vperm.slane %v3849_v61, %v3550_v12 }
 0x372   : > { %1672 = vperm.xlu0 %2302, %v3452_v45   ;;  %1639 = vperm.xlu1 %2301, %v1156_v36   ;;  %v1169_v45 = vmul.f32 %v3473_v18, %v3460_v55  ;;  %v1162_v55 = vmul.f32 %v3477_v25, %v4266_v34 }
 0x374   : > { %v1514_v17 = vpop.permute.xlu1 %1513  ;;  %v3870_v15 = vpop.permute.xlu0 %1543 }
 0x375   : > { %v1815_v24 = vperm.slane %v1514_v17, %v3585_v11  ;;  %v1832_v61 = vperm.slane %v3870_v15, %v3555_v7 }
 0x376   : > { %1645 = vperm.xlu2 %2300, %v1158_v49  }
 0x377   : > { %v1816_v56 = vsel %vm1696_vm3, %v1815_v24, %v1814_v4  ;;  %v1819_v4 = vsel %vm1688_vm1, %v1818_v37, %v1817_v30 }
 0x378   : > { %v3877_v40 = vsel %vm1915_vm4, %v1816_v56, %v1809_v0  ;;  %v3879_v57 = vpop.permute.xlu2 %1546  ;;  %v1829_v56 = vperm.slane %v3864_v29, %v3585_v11 }
 0x379   : > { %v1834_v29 = vperm.slane %v3879_v57, %v3571_v22 }
 0x37a   : > { %1678 = vperm.xlu0 %2302, %v1169_v45   ;;  %1648 = vperm.xlu1 %2301, %v1159_v33  }
 0x37c   : > { %v1523_v41 = vpop.permute.xlu1 %1522  ;;  %v3885_v48 = vpop.permute.xlu0 %1552 }
 0x37d   : > { %v1820_v23 = vperm.slane %v1523_v41, %v3571_v22  ;;  %v1838_v13 = vperm.slane %v3885_v48, %v3550_v12 }
 0x37e   : > { %1654 = vperm.xlu2 %2300, %v1161_v63  }
 0x37f   : > { %v1821_v45 = vsel %vm1692_vm2, %v1820_v23, %v1819_v4 }
 0x380   : > { %v1556_v50 = vpop.permute.xlu2 %1555  ;;  %v1823_v34 = vsel %vm1696_vm3, %v1822_v27, %v1821_v45 }
 0x381   : > { %v1839_v17 = vperm.slane %v1556_v50, %v3555_v7  ;;  %v1937_v51 = vsel %vm1917_vm5, %v1823_v34, %v3877_v40  ;;  %v1954_v40 = vsel %vm628_vm0, %v3705_v42, 0.0 }
 0x382   : > { %1660 = vperm.xlu1 %2301, %v3465_v26   ;;  %v1166_v26 = vmul.f32 %v3477_v25, %v3458_v43  ;;  %v1957_v43 = vsel %vm628_vm0, %v3837_v31, 0.0 }
 0x383   : > { %v1840_v50 = vsel %vm1688_vm1, %v1839_v17, %v1838_v13 }
 0x384   : > { %v1532_v21 = vpop.permute.xlu1 %1531  ;;  %v3890_v32 = vpop.permute.xlu0 %1561 }
 0x385   : > { %v1825_v35 = vperm.slane %v1532_v21, %v3555_v7 }
 0x386   : > { %1657 = vperm.xlu2 %2300, %v1162_v55   ;;  %v1843_v55 = vperm.slane %v3890_v32, %v3585_v11 }
 0x387   : > { %v1826_v28 = vsel %vm1688_vm1, %v1825_v35, %v1824_v3 }
 0x388   : > { %v1565_v1 = vpop.permute.xlu2 %1564  ;;  %v1828_v60 = vsel %vm1692_vm2, %v1827_v53, %v1826_v28 }
 0x389   : > { %v1845_v49 = vperm.slane %v1565_v1, %v3550_v12  ;;  %v1830_v52 = vsel %vm1696_vm3, %v1829_v56, %v1828_v60 }
 0x38a   : > { %1666 = vperm.xlu1 %2301, %v1165_v9  }
 0x38c   : > { %v1541_v47 = vpop.permute.xlu1 %1540  ;;  %v1571_v46 = vpop.permute.xlu0 %1570 }
 0x38d   : > { %v1831_v10 = vperm.slane %v1541_v47, %v3550_v12  ;;  %v1848_v21 = vperm.slane %v1571_v46, %v3571_v22 }
 0x38e   : > { %1675 = vperm.xlu2 %2300, %v1168_v62  }
 0x38f   : > { %v1833_v41 = vsel %vm1688_vm1, %v1832_v61, %v1831_v10 }
 0x390   : > { %v3898_v20 = vpop.permute.xlu2 %1573  ;;  %v1835_v9 = vsel %vm1692_vm2, %v1834_v29, %v1833_v41 }
 0x391   : > { %v1850_v46 = vperm.slane %v3898_v20, %v3585_v11 }
 0x392   : > { %1669 = vperm.xlu1 %2301, %v1166_v26  }
 0x394   : > { %v1550_v14 = vpop.permute.xlu1 %1549  ;;  %v1580_v39 = vpop.permute.xlu0 %1579 }
 0x395   : > { %v1836_v15 = vperm.slane %v1550_v14, %v3585_v11  ;;  %v1853_v48 = vperm.slane %v1580_v39, %v3555_v7  ;;  %v1938_v14 = vsel %vm1919_vm6, %v1830_v52, %v1937_v51 }
 0x396   : > { %1681 = vperm.xlu2 %2300, %v1170_v6  }
 0x397   : > { %v1837_v62 = vsel %vm1696_vm3, %v1836_v15, %v1835_v9 }
 0x398   : > { %v1583_v18 = vpop.permute.xlu2 %1582 }
 0x399   : > { %v1855_v26 = vperm.slane %v1583_v18, %v3571_v22 }
 0x39c   : > { %v1559_v19 = vpop.permute.xlu1 %1558  ;;  %v1589_v5 = vpop.permute.xlu0 %1588 }
 0x39d   : > { %v1859_v8 = vperm.slane %v1589_v5, %v3550_v12  ;;  %v1841_v24 = vperm.slane %v1559_v19, %v3571_v22  ;;  %v1939_v5 = vsel %vm1921_vm7, %v1837_v62, %v1938_v14 }
 0x39f   : > { %v1842_v1 = vsel %vm1692_vm2, %v1841_v24, %v1840_v50 }
 0x3a0   : > { %v1592_v59 = vpop.permute.xlu2 %1591  ;;  %v1844_v6 = vsel %vm1696_vm3, %v1843_v55, %v1842_v1 }
 0x3a1   : > { %v1860_v44 = vperm.slane %v1592_v59, %v3555_v7  ;;  %v1940_v59 = vsel %vm1923_vm8, %v1844_v6, %v1939_v5 }
 0x3a3   : > { %v3907_v0 = vsel %vm1688_vm1, %v1860_v44, %v1859_v8 }
 0x3a4   : > { %v1568_v38 = vpop.permute.xlu1 %1567  ;;  %1958 = vadd.xlane.f32.xlu0 %v1957_v43  ;;  %v3911_v25 = vpop.permute.xlu0 %1597 }
 0x3a5   : > { %v1846_v36 = vperm.slane %v1568_v38, %v3555_v7  ;;  %v1864_v35 = vperm.slane %v3911_v25, %v3585_v11 }
 0x3a7   : > { %v1847_v2 = vsel %vm1688_vm1, %v1846_v36, %v1845_v49 }
 0x3a8   : > { %v3913_v58 = vpop.permute.xlu2 %1600  ;;  %v1849_v47 = vsel %vm1692_vm2, %v1848_v21, %v1847_v2 }
 0x3a9   : > { %v1851_v39 = vsel %vm1696_vm3, %v1850_v46, %v1849_v47  ;;  %v1866_v42 = vperm.slane %v3913_v58, %v3550_v12 }
 0x3aa   : > { %v1941_v8 = vsel %vm1925_vm9, %v1851_v39, %v1940_v59 }
 0x3ac   : > { %v1577_v31 = vpop.permute.xlu1 %1576  ;;  %v1607_v33 = vpop.permute.xlu0 %1606 }
 0x3ad   : > { %v1852_v54 = vperm.slane %v1577_v31, %v3550_v12  ;;  %v1869_v27 = vperm.slane %v1607_v33, %v3571_v22 }
 0x3af   : > { %v1854_v57 = vsel %vm1688_vm1, %v1853_v48, %v1852_v54 }
 0x3b0   : > { %v1610_v63 = vpop.permute.xlu2 %1609  ;;  %v1856_v19 = vsel %vm1692_vm2, %v1855_v26, %v1854_v57 }
 0x3b1   : > { %v1871_v25 = vperm.slane %v1610_v63, %v3585_v11 }
 0x3b4   : > { %v1586_v16 = vpop.permute.xlu1 %1585  ;;  %v1616_v18 = vpop.permute.xlu0 %1615 }
 0x3b5   : > { %v1857_v32 = vperm.slane %v1586_v16, %v3585_v11  ;;  %v1874_v1 = vperm.slane %v1616_v18, %v3555_v7 }
 0x3b7   : > { %v1858_v20 = vsel %vm1696_vm3, %v1857_v32, %v1856_v19 }
 0x3b8   : > { %v1619_v44 = vpop.permute.xlu2 %1618  ;;  %v1942_v43 = vsel %vm1927_vm10, %v1858_v20, %v1941_v8 }
 0x3b9   : > { %v1960_v30 = vsel %vm628_vm0, %v1942_v43, 0.0  ;;  %v1876_v32 = vperm.slane %v1619_v44, %v3571_v22 }
 0x3bc   : > { %v1595_v38 = vpop.permute.xlu1 %1594  ;;  %1955 = vadd.xlane.f32.xlu1 %v1954_v40  ;;  %v1625_v31 = vpop.permute.xlu0 %1624 }
 0x3bd   : > { %v1862_v37 = vperm.slane %v1595_v38, %v3571_v22  ;;  %v1880_v47 = vperm.slane %v1625_v31, %v3550_v12 }
 0x3bf   : > { %v1863_v3 = vsel %vm1692_vm2, %v1862_v37, %v3907_v0  ;;  %1961 = vadd.xlane.f32.xlu2 %v1960_v30 }
 0x3c0   : > { %v1865_v23 = vsel %vm1696_vm3, %v1864_v35, %v1863_v3  ;;  %v1628_v36 = vpop.permute.xlu2 %1627 }
 0x3c1   : > { %v1881_v34 = vperm.slane %v1628_v36, %v3555_v7 }
 0x3c3   : > { %v1882_v51 = vsel %vm1688_vm1, %v1881_v34, %v1880_v47 }
 0x3c4   : > { %v1604_v10 = vpop.permute.xlu1 %1603  ;;  %v1634_v49 = vpop.permute.xlu0 %1633 }
 0x3c5   : > { %v1867_v4 = vperm.slane %v1604_v10, %v3555_v7  ;;  %v1885_v5 = vperm.slane %v1634_v49, %v3585_v11 }
 0x3c7   : > { %v1868_v17 = vsel %vm1688_vm1, %v1867_v4, %v1866_v42 }
 0x3c8   : > { %v1870_v28 = vsel %vm1692_vm2, %v1869_v27, %v1868_v17  ;;  %v1637_v24 = vpop.permute.xlu2 %1636 }
 0x3c9   : > { %v1872_v0 = vsel %vm1696_vm3, %v1871_v25, %v1870_v28  ;;  %v1887_v52 = vperm.slane %v1637_v24, %v3550_v12 }
 0x3ca   : > { %v1943_v53 = vsel %vm1915_vm4, %v1872_v0, %v1865_v23 }
 0x3cc   : > { %v1613_v61 = vpop.permute.xlu1 %1612  ;;  %v1643_v58 = vpop.permute.xlu0 %1642 }
 0x3cd   : > { %v1873_v21 = vperm.slane %v1613_v61, %v3550_v12  ;;  %v1890_v6 = vperm.slane %v1643_v58, %v3571_v22 }
 0x3cf   : > { %v1875_v46 = vsel %vm1688_vm1, %v1874_v1, %v1873_v21 }
 0x3d0   : > { %v1646_v45 = vpop.permute.xlu2 %1645  ;;  %v1877_v20 = vsel %vm1692_vm2, %v1876_v32, %v1875_v46 }
 0x3d1   : > { %v1892_v8 = vperm.slane %v1646_v45, %v3585_v11 }
 0x3d4   : > { %v1622_v56 = vpop.permute.xlu1 %1621  ;;  %v1652_v54 = vpop.permute.xlu0 %1651 }
 0x3d5   : > { %v1895_v57 = vperm.slane %v1652_v54, %v3555_v7  ;;  %v1878_v62 = vperm.slane %v1622_v56, %v3585_v11 }
 0x3d7   : > { %v1879_v44 = vsel %vm1696_vm3, %v1878_v62, %v1877_v20 }
 0x3d8   : > { %v1655_v60 = vpop.permute.xlu2 %1654  ;;  %v1944_v42 = vsel %vm1917_vm5, %v1879_v44, %v1943_v53 }
 0x3d9   : > { %v1897_v39 = vperm.slane %v1655_v60, %v3571_v22 }
 0x3dc   : > { %v1631_v13 = vpop.permute.xlu1 %1630  ;;  %v1664_v41 = vpop.permute.xlu0 %1663 }
 0x3dd   : > { %v1883_v9 = vperm.slane %v1631_v13, %v3571_v22  ;;  %v1902_v23 = vperm.slane %v1664_v41, %v3555_v7 }
 0x3df   : > { %v1884_v19 = vsel %vm1692_vm2, %v1883_v9, %v1882_v51 }
 0x3e0   : > { %v1658_v2 = vpop.permute.xlu2 %1657  ;;  %v1886_v37 = vsel %vm1696_vm3, %v1885_v5, %v1884_v19 }
 0x3e1   : > { %v1899_v35 = vperm.slane %v1658_v2, %v3585_v11  ;;  %v1945_v17 = vsel %vm1919_vm6, %v1886_v37, %v1944_v42 }
 0x3e4   : > { %v1640_v33 = vpop.permute.xlu1 %1639  ;;  %v1673_v29 = vpop.permute.xlu0 %1672 }
 0x3e5   : > { %v1888_v48 = vperm.slane %v1640_v33, %v3555_v7  ;;  %v1908_v36 = vperm.slane %v1673_v29, %v3550_v12  ;;  %v494_v33 = vld [vmem:[%s493_s9] sm:$0x1] }
 0x3e7   : > { %v1889_v26 = vsel %vm1688_vm1, %v1888_v48, %v1887_v52 }
 0x3e8   : > { %v1676_v50 = vpop.permute.xlu2 %1675  ;;  %v1891_v59 = vsel %vm1692_vm2, %v1890_v6, %v1889_v26 }
 0x3e9   : > { %v1909_v30 = vperm.slane %v1676_v50, %v3555_v7  ;;  %v1893_v31 = vsel %vm1696_vm3, %v1892_v8, %v1891_v59 }
 0x3eb   : > { %v1910_v7 = vsel %vm1688_vm1, %v1909_v30, %v1908_v36 }
 0x3ec   : > { %v1649_v15 = vpop.permute.xlu1 %1648  ;;  %v1679_v18 = vpop.permute.xlu0 %1678 }
 0x3ed   : > { %v1894_v55 = vperm.slane %v1649_v15, %v3550_v12  ;;  %v1911_v10 = vperm.slane %v1679_v18, %v3571_v22 }
 0x3ef   : > { %v1896_v14 = vsel %vm1688_vm1, %v1895_v57, %v1894_v55  ;;  %v1912_v53 = vsel %vm1692_vm2, %v1911_v10, %v1910_v7 }
 0x3f0   : > { %v1898_v40 = vsel %vm1692_vm2, %v1897_v39, %v1896_v14  ;;  %v1682_v43 = vpop.permute.xlu2 %1681 }
 0x3f1   : > { %v1913_v4 = vperm.slane %v1682_v43, %v3585_v11  ;;  %v1900_v25 = vsel %vm1696_vm3, %v1899_v35, %v1898_v40 }
 0x3f3   : > { %v1914_v24 = vsel %vm1696_vm3, %v1913_v4, %v1912_v53 }
 0x3f4   : > { %v1661_v63 = vpop.permute.xlu1 %1660 }
 0x3f5   : > { %v1901_v38 = vperm.slane %v1661_v63, %v3550_v12 }
 0x3f7   : > { %v1903_v28 = vsel %vm1688_vm1, %v1902_v23, %v1901_v38 }
 0x3fc   : > { %v1667_v16 = vpop.permute.xlu1 %1666 }
 0x3fd   : > { %v1904_v3 = vperm.slane %v1667_v16, %v3571_v22  ;;  %v1946_v22 = vsel %vm1921_vm7, %v1893_v31, %v1945_v17 }
 0x3fe   : > { %v1947_v49 = vsel %vm1923_vm8, %v1900_v25, %v1946_v22 }
 0x3ff   : > { %v1905_v61 = vsel %vm1692_vm2, %v1904_v3, %v1903_v28 }
 0x404   : > { %v1670_v27 = vpop.permute.xlu1 %1669 }
 0x405   : > { %v1906_v0 = vperm.slane %v1670_v27, %v3585_v11 }
 0x407   : > { %v1907_v12 = vsel %vm1696_vm3, %v1906_v0, %v1905_v61 }
 0x408   : > { %v1948_v56 = vsel %vm1925_vm9, %v1907_v12, %v1947_v49 }
 0x409   : > { %v1949_v11 = vsel %vm1927_vm10, %v1914_v24, %v1948_v56 }
 0x40a   : > { %v1963_v58 = vsel %vm628_vm0, %v1949_v11, 0.0 }
 0x40b   : > { %1964 = vadd.xlane.f32.xlu1 %v1963_v58 }
 0x417   : > { %v1959_v13 = vpop.xlane.xlu0 %1958 }
 0x42f   : > { %v1956_v45 = vpop.xlane.xlu1 %1955 }
 0x430   : > { %1966 = vxpose.xlu2.b32.start [1/4] (short) (narrow) %v1956_v45, 8 }
 0x432   : > { %v1962_v54 = vpop.xlane.xlu2 %1961 }
 0x438   : > { %1967 = vxpose.xlu2.b32.cont [2/4] (short) (narrow) %v1959_v13, 8 }
 0x440   : > { %1968 = vxpose.xlu2.b32.cont [3/4] (short) (narrow) %v1962_v54, 8 }
 0x47e   : > { %v1965_v60 = vpop.xlane.xlu1 %1964 }
 0x47f   : > { %1969 = vxpose.xlu2.b32.end [4/4] (short) (narrow) %v1965_v60, 8 }
 0x500   : > { %v1982_v41 = vpop.trf.xlu2 }
 0x501   : > { %v1998_v15 = vmul.f32 %v1982_v41, %v494_v33 }
 0x503   : > { %v2000_v2 = vsel %vm1999_vm11, %v1998_v15, 0.0 }
 0x504   : > { %2001 = vadd.xlane.f32.xlu0 %v2000_v2 }
 0x577   : > { %v2002_v63 = vpop.xlane.xlu0 %2001 }
 0x578   : > { %2005 = vst.msk [vmem:[%s2003_s21] sm:$0x1] %vm2004_vm12, %v2002_v63 }
 0x579 PF: > { %s32_s6 = sadd.s32 1, %s2538_s6   ;;  %s4272_s29 = sld [smem:[#allocation24_spill]] }
 0x57a   : > { %p29_p13 = scmp.ge.s32.totalorder %s32_s6, 18   ;;  %s4273_s5 = sld [smem:[#allocation17_spill]] }
 0x57b   : > { %s4274_s26 = sld [smem:[#allocation25_spill]]  ;;  %s4279_s22 = smov %s2502_s23 }
 0x57c   : > { %s4275_s27 = sld [smem:[#allocation20_spill]]  ;;  %s4280_s23 = smov %s2506_s24 }
 0x57d   : > { %s4276_s28 = sld [smem:[#allocation21_spill]]  ;;  %s4282_s25 = smov %s2514_s0 }
 0x57e   : > { %s4277_s15 = sld [smem:[#allocation22_spill]] }
 0x57f   : > { %s4278_s30 = sld [smem:[#allocation23_spill]]  ;;  %s4281_s24 = smov %s4272_s29 }
 0x580   : > { %s4283_s0 = smov %s4273_s5  ;;  %31 = sbr.rel (!%p29_p13) target bundleno = 18 (0x12), region = 117 }
 0x584   : > { %s4284_s29 = smov %s4277_s15 }
 0x585   :  { %2025 = vsyncpa [#allocation5], 1 }
 0x586   :  { %2027 = vsyncpa [#allocation5 + $0x1], 1 }
 0x587   :  { %2028 = vsyncpa [#allocation7], 1 }
 0x588   :  { %2030 = vsyncpa [#allocation7 + $0x1], 1 }
 0x589   :  { %2031 = vsyncpa [#allocation10], 1 }
 0x58a   :  { %2033 = vsyncpa [#allocation10 + $0x1], 1 }

</bundles_post_ra>
